<compile_context>
chip_gen: v6e
topology: v6e:2x2x1
jax: 0.10.0
libtpu: 0.0.40
codegen_flags: <defaults>
</compile_context>

<pallas_src>
import functools
import math

import numpy as np

import jax
import jax.numpy as jnp
from jax.experimental import pallas as pl
from jax.experimental.pallas import tpu as pltpu


# ------------------------------ shared helpers --------------------------------

def _layer_norm(x, gamma, beta, eps=1e-5):
    mu = jnp.mean(x, axis=-1, keepdims=True)
    var = jnp.mean((x - mu) ** 2, axis=-1, keepdims=True)
    return (x - mu) * jax.lax.rsqrt(var + eps) * gamma + beta


def _round_up(x, m):
    return ((x + m - 1) // m) * m


# ------------------------------- Pallas kernel ---------------------------------

def _critic_kernel(hidden, compute_dtype,
                   x_ref, mask_ref, we_ref, vec_ref, wqkv_ref, bqkv_ref, wo_ref,
                   w1_ref, w2_ref, wf1_ref, wf2_ref, bf2_ref,
                   out_ref):
    f32 = jnp.float32
    cdt = compute_dtype

    # packed (9, H) f32 vectors: [be, bo, g1, bt1, b1, b2, g2, bt2, bf1]
    vp = vec_ref[...]
    be, bo, g1, bt1, b1, b2, g2, bt2, bf1 = (vp[i:i + 1, :] for i in range(9))

    # embed Linear + ReLU (x and we stay f32: K=in_dim is tiny, keeps first-layer precision)
    h = jnp.dot(x_ref[...], we_ref[...], preferred_element_type=f32) + be
    h = jnp.maximum(h, 0.0)

    # fused Q/K/V projection: one (TM, H) @ (H, 3H) matmul
    qkv = jnp.dot(h.astype(cdt), wqkv_ref[...], preferred_element_type=f32)
    qkv = qkv + bqkv_ref[...].astype(f32)
    q = qkv[:, :hidden]
    k = qkv[:, hidden:2 * hidden]
    v = qkv[:, 2 * hidden:]

    # block-diagonal masked self-attention: mask_ref is a precomputed (TM, TM) additive
    # bias (0 within a sample's group of n_agents rows, -1e30 elsewhere) -- loop-invariant,
    # so no per-step iota / divide / select work.
    scale = 1.0 / math.sqrt(hidden)
    s = jax.lax.dot_general(q.astype(cdt), k.astype(cdt),
                            (((1,), (1,)), ((), ())),
                            preferred_element_type=f32) * scale
    s = s + mask_ref[...]
    s = s - jnp.max(s, axis=-1, keepdims=True)
    p = jnp.exp(s)
    denom = jnp.sum(p, axis=-1, keepdims=True)
    # normalize after the PV matmul: TM*H multiplies instead of TM*TM, EUP reciprocal.
    a = jnp.dot(p.astype(cdt), v.astype(cdt), preferred_element_type=f32)
    a = a * pl.reciprocal(denom, approx=True)
    o = jnp.dot(a.astype(cdt), wo_ref[...], preferred_element_type=f32) + bo
    r1 = _layer_norm(h + o, g1, bt1)

    # position-wise FFN + residual + LayerNorm
    f = jnp.dot(r1.astype(cdt), w1_ref[...], preferred_element_type=f32) + b1
    f = jnp.maximum(f, 0.0)
    f = jnp.dot(f.astype(cdt), w2_ref[...], preferred_element_type=f32) + b2
    r2 = _layer_norm(r1 + f, g2, bt2)

    # outer ReLU, then feedforward head: Linear + ReLU + Linear(padded discrete_classes)
    ae = jnp.maximum(r2, 0.0)
    z = jnp.dot(ae.astype(cdt), wf1_ref[...], preferred_element_type=f32) + bf1
    z = jnp.maximum(z, 0.0)
    logits = jnp.dot(z.astype(cdt), wf2_ref[...], preferred_element_type=f32)
    logits = logits + bf2_ref[...].astype(f32)
    out_ref[...] = logits.astype(out_ref.dtype)


# ------------------------------ one-time weight prep -----------------------------

def prepare_critic_params(params, compute_dtype=jnp.float32):
    """Hoisted per-call prep: cast weights, pack the 9 H-wide vectors, pad classes to 128x."""
    cdt = jnp.dtype(compute_dtype)
    hidden = params["we"].shape[1]
    n_classes = params["wf2"].shape[1]
    padded_classes = _round_up(n_classes, 128)          # 255 -> 256: lane-dense output/matmul

    wf2, bf2 = params["wf2"], params["bf2"]
    if padded_classes != n_classes:
        wf2 = jnp.pad(wf2, ((0, 0), (0, padded_classes - n_classes)))
        bf2 = jnp.pad(bf2, ((0, 0), (0, padded_classes - n_classes)))

    vecpack = jnp.concatenate(
        [params[k] for k in ("be", "bo", "g1", "bt1", "b1", "b2", "g2", "bt2", "bf1")],
        axis=0).astype(jnp.float32)

    weights = (
        params["we"].astype(jnp.float32),     # (in_dim, H)  f32 (x stays f32, K tiny)
        vecpack,                              # (9, H)       f32
        params["wqkv"].astype(cdt),           # (H, 3H)
        params["bqkv"].astype(jnp.float32),   # (1, 3H)
        params["wo"].astype(cdt),             # (H, H)
        params["w1"].astype(cdt),             # (H, H)
        params["w2"].astype(cdt),             # (H, H)
        params["wf1"].astype(cdt),            # (H, H)
        wf2.astype(cdt),                      # (H, Cpad)
        bf2.astype(jnp.float32),              # (1, Cpad)
    )
    return dict(weights=weights, hidden=hidden, n_classes=n_classes,
                padded_classes=padded_classes, compute_dtype=cdt)


# --------------------------------- wrapper -------------------------------------

def dreamerv3_critic_forward(prepared, state_features, actions=None, *,
                             block_rows=None, out_dtype=jnp.float32):
    """Pallas-backed DreamerV3Critic forward, returning the DiscDist logits.

    `actions` is accepted for API parity with the PyTorch module but unused."""
    *batch_dims, n_agents, in_dim = state_features.shape
    hidden = prepared["hidden"]
    n_classes = prepared["n_classes"]
    padded_classes = prepared["padded_classes"]
    cdt = prepared["compute_dtype"]
    weights = prepared["weights"]
    odt = jnp.dtype(out_dtype)

    b_total = int(math.prod(batch_dims)) if batch_dims else 1
    rows = b_total * n_agents

    # Row-block size: multiple of n_agents (block-diagonal attention) and of the sublane
    # packing (8 for f32, 16 when any bf16 block is involved). Softmax work is O(TM^2),
    # so keep TM in the 128 (v5e) .. 256 (v6e/v7x) range; never grow it further.
    if block_rows is None:
        try:
            kind = jax.devices()[0].device_kind.lower()
        except Exception:
            kind = ""
        block_rows = 128 if "v5" in kind else 256
    block_rows = min(block_rows, 256)
    sub = 16 if (cdt == jnp.dtype(jnp.bfloat16) or odt == jnp.dtype(jnp.bfloat16)) else 8
    align = math.lcm(sub, n_agents)
    tm = min(_round_up(block_rows, align), _round_up(rows, align))
    # v7x has 2 TensorCores: make sure the parallel grid has >= 2 steps when possible.
    if rows > align and _round_up(rows, tm) // tm < 2:
        tm = _round_up(pl.cdiv(rows, 2), align)
    padded_rows = _round_up(rows, tm)
    grid = (padded_rows // tm,)

    # Flatten (batch..., n_agents) -> rows; keep x in f32 (first matmul runs f32).
    x = state_features.reshape(rows, in_dim).astype(jnp.float32)
    if padded_rows != rows:
        # Padding rows form their own all-zero attention groups; they are masked away
        # from real rows by the block-diagonal mask and sliced off below.
        x = jnp.pad(x, ((0, padded_rows - rows), (0, 0)))

    # Precomputed loop-invariant block-diagonal additive mask (0 / -1e30), built with
    # numpy so it is a baked constant under jit (no per-call device work).
    gid = np.arange(tm) // n_agents
    mask = jnp.asarray(
        np.where(gid[:, None] == gid[None, :], 0.0, -1e30).astype(np.float32))

    # Grid-invariant inputs (mask + weights): constant index_map, single-buffered.
    invariant = (mask,) + tuple(weights)
    inv_specs = [pl.BlockSpec(w.shape, lambda i: (0, 0),
                              pipeline_mode=pl.Buffered(1)) for w in invariant]

    # Explicit VMEM budget: invariants + double-buffered x/out blocks + score/prob slabs
    # and (TM, H) activations, with headroom; clamped to stay sane on v7x's 64 MiB VMEM.
    inv_bytes = sum(w.size * w.dtype.itemsize for w in invariant)
    io_bytes = 2 * tm * in_dim * 4 + 2 * tm * padded_classes * odt.itemsize
    scratch_bytes = 2 * tm * tm * 4 + 10 * tm * hidden * 4
    vmem_limit = int(min(max(2 * (inv_bytes + io_bytes + scratch_bytes), 24 << 20),
                         56 << 20))

    kernel = functools.partial(_critic_kernel, hidden, cdt)

    out = pl.pallas_call(
        kernel,
        out_shape=jax.ShapeDtypeStruct((padded_rows, padded_classes), odt),
        grid_spec=pltpu.PrefetchScalarGridSpec(
            num_scalar_prefetch=0,
            grid=grid,
            in_specs=[pl.BlockSpec((tm, in_dim), lambda i: (i, 0))] + inv_specs,
            out_specs=pl.BlockSpec((tm, padded_classes), lambda i: (i, 0)),
        ),
        compiler_params=pltpu.CompilerParams(
            dimension_semantics=("parallel",),
            vmem_limit_bytes=vmem_limit,
        ),
    )(x, mask, *weights)

    out = out[:rows, :n_classes]
    return out.reshape(*batch_dims, n_agents, n_classes)


# ------------------------------ parameter init ----------------------------------

def _linear_init(key, fan_in, fan_out):
    kw, kb = jax.random.split(key)
    bound = 1.0 / math.sqrt(fan_in)
    w = jax.random.uniform(kw, (fan_in, fan_out), jnp.float32, -bound, bound)
    b = jax.random.uniform(kb, (1, fan_out), jnp.float32, -bound, bound)
    return w, b


def init_params(key, in_dim, hidden, discrete_classes):
    keys = jax.random.split(key, 10)
    p = {}
    p["we"], p["be"] = _linear_init(keys[0], in_dim, hidden)          # self.embed Linear
    wq, bq = _linear_init(keys[1], hidden, hidden)                    # attention Q
    wk, bk = _linear_init(keys[2], hidden, hidden)                    # attention K
    wv, bv = _linear_init(keys[3], hidden, hidden)                    # attention V
    p["wqkv"] = jnp.concatenate([wq, wk, wv], axis=1)                 # fused (H, 3H)
    p["bqkv"] = jnp.concatenate([bq, bk, bv], axis=1)                 # fused (1, 3H)
    p["wo"], p["bo"] = _linear_init(keys[4], hidden, hidden)          # attention out proj
    p["g1"] = jnp.ones((1, hidden), jnp.float32)                      # LayerNorm 1
    p["bt1"] = jnp.zeros((1, hidden), jnp.float32)
    p["w1"], p["b1"] = _linear_init(keys[5], hidden, hidden)          # FFN layer 1
    p["w2"], p["b2"] = _linear_init(keys[6], hidden, hidden)          # FFN layer 2
    p["g2"] = jnp.ones((1, hidden), jnp.float32)                      # LayerNorm 2
    p["bt2"] = jnp.zeros((1, hidden), jnp.float32)
    p["wf1"], p["bf1"] = _linear_init(keys[7], hidden, hidden)        # feedforward_model L1
    p["wf2"], p["bf2"] = _linear_init(keys[8], hidden, discrete_classes)  # L2 -> classes
    return p


# ----------------------------- pure-JAX reference --------------------------------

def reference_forward(params, state_features, actions=None):
    p = params
    hidden = p["we"].shape[1]
    x = state_features.astype(jnp.float32)
    h = jax.nn.relu(x @ p["we"] + p["be"])
    qkv = h @ p["wqkv"] + p["bqkv"]
    q, k, v = qkv[..., :hidden], qkv[..., hidden:2 * hidden], qkv[..., 2 * hidden:]
    s = jnp.einsum("...ad,...bd->...ab", q, k) / jnp.sqrt(jnp.float32(hidden))
    att = jax.nn.softmax(s, axis=-1)
    o = jnp.einsum("...ab,...bd->...ad", att, v) @ p["wo"] + p["bo"]
    r1 = _layer_norm(h + o, p["g1"], p["bt1"])
    f = jax.nn.relu(r1 @ p["w1"] + p["b1"]) @ p["w2"] + p["b2"]
    r2 = _layer_norm(r1 + f, p["g2"], p["bt2"])
    ae = jax.nn.relu(r2)
    z = jax.nn.relu(ae @ p["wf1"] + p["bf1"])
    return z @ p["wf2"] + p["bf2"]


# -------------------------------------- main --------------------------------------

if __name__ == "__main__":
    key = jax.random.PRNGKey(0)
    k_param, k_state, k_act = jax.random.split(key, 3)

    batch = (2, 3)            # arbitrary leading batch dims (time, envs)
    n_agents = 4
    in_dim = 24
    hidden = 128
    discrete_classes = 255    # DreamerV3-style value bins
    action_dim = 5

    params = init_params(k_param, in_dim, hidden, discrete_classes)
    state_features = jax.random.normal(k_state, (*batch, n_agents, in_dim), jnp.float32)
    actions = jax.random.normal(k_act, (*batch, n_agents, action_dim), jnp.float32)  # unused

    ref = reference_forward(params, state_features, actions)

    # Full-precision path (v5e default): f32 matmuls, f32 output, tight correctness check.
    prepared_f32 = prepare_critic_params(params, compute_dtype=jnp.float32)
    fwd_f32 = jax.jit(lambda sf: dreamerv3_critic_forward(
        prepared_f32, sf, out_dtype=jnp.float32))
    logits = jax.block_until_ready(fwd_f32(state_features))
    assert logits.shape == (*batch, n_agents, discrete_classes), logits.shape
    assert jnp.allclose(logits, ref, rtol=5e-3, atol=5e-3), \
        float(jnp.max(jnp.abs(logits - ref)))

    # bf16 perf path (v6e/v7x): bf16 matmul operands + bf16 logits, loose sanity check.
    prepared_bf16 = prepare_critic_params(params, compute_dtype=jnp.bfloat16)
    fwd_bf16 = jax.jit(lambda sf: dreamerv3_critic_forward(
        prepared_bf16, sf, out_dtype=jnp.bfloat16))
    logits_bf16 = jax.block_until_ready(fwd_bf16(state_features))
    assert logits_bf16.shape == (*batch, n_agents, discrete_classes), logits_bf16.shape
    assert jnp.allclose(logits_bf16.astype(jnp.float32), ref, rtol=5e-2, atol=1e-1), \
        float(jnp.max(jnp.abs(logits_bf16.astype(jnp.float32) - ref)))

    print("KERNEL_OK")
</pallas_src>

<mosaic_0001>
module attributes {stable_mosaic.version = 11 : i64} {
  func.func @_critic_kernel(%arg0: i32, %arg1: memref<16x24xf32, #tpu.memory_space<vmem>>, %arg2: memref<16x16xf32, #tpu.memory_space<vmem>>, %arg3: memref<24x128xf32, #tpu.memory_space<vmem>>, %arg4: memref<9x128xf32, #tpu.memory_space<vmem>>, %arg5: memref<128x384xf32, #tpu.memory_space<vmem>>, %arg6: memref<1x384xf32, #tpu.memory_space<vmem>>, %arg7: memref<128x128xf32, #tpu.memory_space<vmem>>, %arg8: memref<128x128xf32, #tpu.memory_space<vmem>>, %arg9: memref<128x128xf32, #tpu.memory_space<vmem>>, %arg10: memref<128x128xf32, #tpu.memory_space<vmem>>, %arg11: memref<128x256xf32, #tpu.memory_space<vmem>>, %arg12: memref<1x256xf32, #tpu.memory_space<vmem>>, %arg13: memref<16x256xf32, #tpu.memory_space<vmem>>) attributes {dimension_semantics = [#tpu.dimension_semantics<parallel>], iteration_bounds = array<i64: 2>, scalar_prefetch = 0 : i64, scratch_operands = 0 : i64, tpu.core_type = #tpu.core_type<tc>, window_params = [{transform_indices = @transform_0, window_bounds = array<i64: 16, 24>}, {pipeline_mode = #tpu.pipeline_mode<synchronous>, transform_indices = @transform_1, window_bounds = array<i64: 16, 16>}, {pipeline_mode = #tpu.pipeline_mode<synchronous>, transform_indices = @transform_2, window_bounds = array<i64: 24, 128>}, {pipeline_mode = #tpu.pipeline_mode<synchronous>, transform_indices = @transform_3, window_bounds = array<i64: 9, 128>}, {pipeline_mode = #tpu.pipeline_mode<synchronous>, transform_indices = @transform_4, window_bounds = array<i64: 128, 384>}, {pipeline_mode = #tpu.pipeline_mode<synchronous>, transform_indices = @transform_5, window_bounds = array<i64: 1, 384>}, {pipeline_mode = #tpu.pipeline_mode<synchronous>, transform_indices = @transform_6, window_bounds = array<i64: 128, 128>}, {pipeline_mode = #tpu.pipeline_mode<synchronous>, transform_indices = @transform_7, window_bounds = array<i64: 128, 128>}, {pipeline_mode = #tpu.pipeline_mode<synchronous>, transform_indices = @transform_8, window_bounds = array<i64: 128, 128>}, {pipeline_mode = #tpu.pipeline_mode<synchronous>, transform_indices = @transform_9, window_bounds = array<i64: 128, 128>}, {pipeline_mode = #tpu.pipeline_mode<synchronous>, transform_indices = @transform_10, window_bounds = array<i64: 128, 256>}, {pipeline_mode = #tpu.pipeline_mode<synchronous>, transform_indices = @transform_11, window_bounds = array<i64: 1, 256>}, {transform_indices = @transform_12, window_bounds = array<i64: 16, 256>}]} {
    %c0 = arith.constant 0 : index
    %c0_0 = arith.constant 0 : index
    %0 = vector.load %arg4[%c0, %c0_0] : memref<9x128xf32, #tpu.memory_space<vmem>>, vector<9x128xf32>
    %1 = vector.extract_strided_slice %0 {offsets = [0, 0], sizes = [1, 128], strides = [1, 1]} : vector<9x128xf32> to vector<1x128xf32>
    %2 = vector.extract_strided_slice %0 {offsets = [1, 0], sizes = [1, 128], strides = [1, 1]} : vector<9x128xf32> to vector<1x128xf32>
    %3 = vector.extract_strided_slice %0 {offsets = [2, 0], sizes = [1, 128], strides = [1, 1]} : vector<9x128xf32> to vector<1x128xf32>
    %4 = vector.extract_strided_slice %0 {offsets = [3, 0], sizes = [1, 128], strides = [1, 1]} : vector<9x128xf32> to vector<1x128xf32>
    %5 = vector.extract_strided_slice %0 {offsets = [4, 0], sizes = [1, 128], strides = [1, 1]} : vector<9x128xf32> to vector<1x128xf32>
    %6 = vector.extract_strided_slice %0 {offsets = [5, 0], sizes = [1, 128], strides = [1, 1]} : vector<9x128xf32> to vector<1x128xf32>
    %7 = vector.extract_strided_slice %0 {offsets = [6, 0], sizes = [1, 128], strides = [1, 1]} : vector<9x128xf32> to vector<1x128xf32>
    %8 = vector.extract_strided_slice %0 {offsets = [7, 0], sizes = [1, 128], strides = [1, 1]} : vector<9x128xf32> to vector<1x128xf32>
    %9 = vector.extract_strided_slice %0 {offsets = [8, 0], sizes = [1, 128], strides = [1, 1]} : vector<9x128xf32> to vector<1x128xf32>
    %c0_1 = arith.constant 0 : index
    %c0_2 = arith.constant 0 : index
    %10 = vector.load %arg1[%c0_1, %c0_2] : memref<16x24xf32, #tpu.memory_space<vmem>>, vector<16x24xf32>
    %c0_3 = arith.constant 0 : index
    %c0_4 = arith.constant 0 : index
    %11 = vector.load %arg3[%c0_3, %c0_4] : memref<24x128xf32, #tpu.memory_space<vmem>>, vector<24x128xf32>
    %cst = arith.constant dense<0.000000e+00> : vector<16x128xf32>
    %12 = tpu.matmul %10, %11, %cst {dimension_numbers = #tpu.dot_dimension_numbers<[1], [0], [0], [1], [0, 0, 1, 1], [], []>} : vector<16x24xf32>, vector<24x128xf32>, vector<16x128xf32> -> vector<16x128xf32>
    %13 = vector.broadcast %1 : vector<1x128xf32> to vector<16x128xf32>
    %14 = arith.addf %12, %13 : vector<16x128xf32>
    %cst_5 = arith.constant 0.000000e+00 : f32
    %15 = vector.broadcast %cst_5 : f32 to vector<16x128xf32>
    %16 = arith.maximumf %14, %15 : vector<16x128xf32>
    %c0_6 = arith.constant 0 : index
    %c0_7 = arith.constant 0 : index
    %17 = vector.load %arg5[%c0_6, %c0_7] : memref<128x384xf32, #tpu.memory_space<vmem>>, vector<128x384xf32>
    %cst_8 = arith.constant dense<0.000000e+00> : vector<16x384xf32>
    %18 = tpu.matmul %16, %17, %cst_8 {dimension_numbers = #tpu.dot_dimension_numbers<[1], [0], [0], [1], [0, 0, 1, 1], [], []>} : vector<16x128xf32>, vector<128x384xf32>, vector<16x384xf32> -> vector<16x384xf32>
    %c0_9 = arith.constant 0 : index
    %c0_10 = arith.constant 0 : index
    %19 = vector.load %arg6[%c0_9, %c0_10] : memref<1x384xf32, #tpu.memory_space<vmem>>, vector<1x384xf32>
    %20 = vector.broadcast %19 : vector<1x384xf32> to vector<16x384xf32>
    %21 = arith.addf %18, %20 : vector<16x384xf32>
    %22 = vector.extract_strided_slice %21 {offsets = [0, 0], sizes = [16, 128], strides = [1, 1]} : vector<16x384xf32> to vector<16x128xf32>
    %23 = vector.extract_strided_slice %21 {offsets = [0, 128], sizes = [16, 128], strides = [1, 1]} : vector<16x384xf32> to vector<16x128xf32>
    %24 = vector.extract_strided_slice %21 {offsets = [0, 256], sizes = [16, 128], strides = [1, 1]} : vector<16x384xf32> to vector<16x128xf32>
    %cst_11 = arith.constant dense<0.000000e+00> : vector<16x16xf32>
    %25 = tpu.matmul %22, %23, %cst_11 {dimension_numbers = #tpu.dot_dimension_numbers<[1], [1], [0], [0], [0, 0, 1, 0], [], []>} : vector<16x128xf32>, vector<16x128xf32>, vector<16x16xf32> -> vector<16x16xf32>
    %cst_12 = arith.constant 0.0883883461 : f32
    %26 = vector.broadcast %cst_12 : f32 to vector<16x16xf32>
    %27 = arith.mulf %25, %26 : vector<16x16xf32>
    %c0_13 = arith.constant 0 : index
    %c0_14 = arith.constant 0 : index
    %28 = vector.load %arg2[%c0_13, %c0_14] : memref<16x16xf32, #tpu.memory_space<vmem>>, vector<16x16xf32>
    %29 = arith.addf %27, %28 : vector<16x16xf32>
    %cst_15 = arith.constant dense<0xFF800000> : vector<16xf32>
    %30 = vector.multi_reduction <maximumf>, %29, %cst_15 [1] : vector<16x16xf32> to vector<16xf32>
    %31 = vector.shape_cast %30 : vector<16xf32> to vector<16x1xf32>
    %32 = vector.broadcast %31 : vector<16x1xf32> to vector<16x16xf32>
    %33 = arith.subf %29, %32 : vector<16x16xf32>
    %34 = math.exp %33 : vector<16x16xf32>
    %cst_16 = arith.constant dense<0.000000e+00> : vector<16xf32>
    %35 = vector.multi_reduction <add>, %34, %cst_16 [1] : vector<16x16xf32> to vector<16xf32>
    %36 = vector.shape_cast %35 : vector<16xf32> to vector<16x1xf32>
    %cst_17 = arith.constant dense<0.000000e+00> : vector<16x128xf32>
    %37 = tpu.matmul %34, %24, %cst_17 {dimension_numbers = #tpu.dot_dimension_numbers<[1], [0], [0], [1], [0, 0, 1, 1], [], []>} : vector<16x16xf32>, vector<16x128xf32>, vector<16x128xf32> -> vector<16x128xf32>
    %38 = tpu.reciprocal %36 {approx = true} : vector<16x1xf32> -> vector<16x1xf32>
    %39 = vector.broadcast %38 : vector<16x1xf32> to vector<16x128xf32>
    %40 = arith.mulf %37, %39 : vector<16x128xf32>
    %c0_18 = arith.constant 0 : index
    %c0_19 = arith.constant 0 : index
    %41 = vector.load %arg7[%c0_18, %c0_19] : memref<128x128xf32, #tpu.memory_space<vmem>>, vector<128x128xf32>
    %cst_20 = arith.constant dense<0.000000e+00> : vector<16x128xf32>
    %42 = tpu.matmul %40, %41, %cst_20 {dimension_numbers = #tpu.dot_dimension_numbers<[1], [0], [0], [1], [0, 0, 1, 1], [], []>} : vector<16x128xf32>, vector<128x128xf32>, vector<16x128xf32> -> vector<16x128xf32>
    %43 = vector.broadcast %2 : vector<1x128xf32> to vector<16x128xf32>
    %44 = arith.addf %42, %43 : vector<16x128xf32>
    %45 = arith.addf %16, %44 : vector<16x128xf32>
    %cst_21 = arith.constant dense<0.000000e+00> : vector<16xf32>
    %46 = vector.multi_reduction <add>, %45, %cst_21 [1] : vector<16x128xf32> to vector<16xf32>
    %47 = vector.shape_cast %46 : vector<16xf32> to vector<16x1xf32>
    %cst_22 = arith.constant 1.280000e+02 : f32
    %48 = vector.broadcast %cst_22 : f32 to vector<16x1xf32>
    %49 = arith.divf %47, %48 : vector<16x1xf32>
    %50 = vector.broadcast %49 : vector<16x1xf32> to vector<16x128xf32>
    %51 = arith.subf %45, %50 : vector<16x128xf32>
    %52 = arith.mulf %51, %51 : vector<16x128xf32>
    %cst_23 = arith.constant dense<0.000000e+00> : vector<16xf32>
    %53 = vector.multi_reduction <add>, %52, %cst_23 [1] : vector<16x128xf32> to vector<16xf32>
    %54 = vector.shape_cast %53 : vector<16xf32> to vector<16x1xf32>
    %cst_24 = arith.constant 1.280000e+02 : f32
    %55 = vector.broadcast %cst_24 : f32 to vector<16x1xf32>
    %56 = arith.divf %54, %55 : vector<16x1xf32>
    %57 = vector.broadcast %49 : vector<16x1xf32> to vector<16x128xf32>
    %58 = arith.subf %45, %57 : vector<16x128xf32>
    %cst_25 = arith.constant 9.99999974E-6 : f32
    %59 = vector.broadcast %cst_25 : f32 to vector<16x1xf32>
    %60 = arith.addf %56, %59 : vector<16x1xf32>
    %61 = math.rsqrt %60 : vector<16x1xf32>
    %62 = vector.broadcast %61 : vector<16x1xf32> to vector<16x128xf32>
    %63 = arith.mulf %58, %62 : vector<16x128xf32>
    %64 = vector.broadcast %3 : vector<1x128xf32> to vector<16x128xf32>
    %65 = arith.mulf %63, %64 : vector<16x128xf32>
    %66 = vector.broadcast %4 : vector<1x128xf32> to vector<16x128xf32>
    %67 = arith.addf %65, %66 : vector<16x128xf32>
    %c0_26 = arith.constant 0 : index
    %c0_27 = arith.constant 0 : index
    %68 = vector.load %arg8[%c0_26, %c0_27] : memref<128x128xf32, #tpu.memory_space<vmem>>, vector<128x128xf32>
    %cst_28 = arith.constant dense<0.000000e+00> : vector<16x128xf32>
    %69 = tpu.matmul %67, %68, %cst_28 {dimension_numbers = #tpu.dot_dimension_numbers<[1], [0], [0], [1], [0, 0, 1, 1], [], []>} : vector<16x128xf32>, vector<128x128xf32>, vector<16x128xf32> -> vector<16x128xf32>
    %70 = vector.broadcast %5 : vector<1x128xf32> to vector<16x128xf32>
    %71 = arith.addf %69, %70 : vector<16x128xf32>
    %cst_29 = arith.constant 0.000000e+00 : f32
    %72 = vector.broadcast %cst_29 : f32 to vector<16x128xf32>
    %73 = arith.maximumf %71, %72 : vector<16x128xf32>
    %c0_30 = arith.constant 0 : index
    %c0_31 = arith.constant 0 : index
    %74 = vector.load %arg9[%c0_30, %c0_31] : memref<128x128xf32, #tpu.memory_space<vmem>>, vector<128x128xf32>
    %cst_32 = arith.constant dense<0.000000e+00> : vector<16x128xf32>
    %75 = tpu.matmul %73, %74, %cst_32 {dimension_numbers = #tpu.dot_dimension_numbers<[1], [0], [0], [1], [0, 0, 1, 1], [], []>} : vector<16x128xf32>, vector<128x128xf32>, vector<16x128xf32> -> vector<16x128xf32>
    %76 = vector.broadcast %6 : vector<1x128xf32> to vector<16x128xf32>
    %77 = arith.addf %75, %76 : vector<16x128xf32>
    %78 = arith.addf %67, %77 : vector<16x128xf32>
    %cst_33 = arith.constant dense<0.000000e+00> : vector<16xf32>
    %79 = vector.multi_reduction <add>, %78, %cst_33 [1] : vector<16x128xf32> to vector<16xf32>
    %80 = vector.shape_cast %79 : vector<16xf32> to vector<16x1xf32>
    %cst_34 = arith.constant 1.280000e+02 : f32
    %81 = vector.broadcast %cst_34 : f32 to vector<16x1xf32>
    %82 = arith.divf %80, %81 : vector<16x1xf32>
    %83 = vector.broadcast %82 : vector<16x1xf32> to vector<16x128xf32>
    %84 = arith.subf %78, %83 : vector<16x128xf32>
    %85 = arith.mulf %84, %84 : vector<16x128xf32>
    %cst_35 = arith.constant dense<0.000000e+00> : vector<16xf32>
    %86 = vector.multi_reduction <add>, %85, %cst_35 [1] : vector<16x128xf32> to vector<16xf32>
    %87 = vector.shape_cast %86 : vector<16xf32> to vector<16x1xf32>
    %cst_36 = arith.constant 1.280000e+02 : f32
    %88 = vector.broadcast %cst_36 : f32 to vector<16x1xf32>
    %89 = arith.divf %87, %88 : vector<16x1xf32>
    %90 = vector.broadcast %82 : vector<16x1xf32> to vector<16x128xf32>
    %91 = arith.subf %78, %90 : vector<16x128xf32>
    %cst_37 = arith.constant 9.99999974E-6 : f32
    %92 = vector.broadcast %cst_37 : f32 to vector<16x1xf32>
    %93 = arith.addf %89, %92 : vector<16x1xf32>
    %94 = math.rsqrt %93 : vector<16x1xf32>
    %95 = vector.broadcast %94 : vector<16x1xf32> to vector<16x128xf32>
    %96 = arith.mulf %91, %95 : vector<16x128xf32>
    %97 = vector.broadcast %7 : vector<1x128xf32> to vector<16x128xf32>
    %98 = arith.mulf %96, %97 : vector<16x128xf32>
    %99 = vector.broadcast %8 : vector<1x128xf32> to vector<16x128xf32>
    %100 = arith.addf %98, %99 : vector<16x128xf32>
    %cst_38 = arith.constant 0.000000e+00 : f32
    %101 = vector.broadcast %cst_38 : f32 to vector<16x128xf32>
    %102 = arith.maximumf %100, %101 : vector<16x128xf32>
    %c0_39 = arith.constant 0 : index
    %c0_40 = arith.constant 0 : index
    %103 = vector.load %arg10[%c0_39, %c0_40] : memref<128x128xf32, #tpu.memory_space<vmem>>, vector<128x128xf32>
    %cst_41 = arith.constant dense<0.000000e+00> : vector<16x128xf32>
    %104 = tpu.matmul %102, %103, %cst_41 {dimension_numbers = #tpu.dot_dimension_numbers<[1], [0], [0], [1], [0, 0, 1, 1], [], []>} : vector<16x128xf32>, vector<128x128xf32>, vector<16x128xf32> -> vector<16x128xf32>
    %105 = vector.broadcast %9 : vector<1x128xf32> to vector<16x128xf32>
    %106 = arith.addf %104, %105 : vector<16x128xf32>
    %cst_42 = arith.constant 0.000000e+00 : f32
    %107 = vector.broadcast %cst_42 : f32 to vector<16x128xf32>
    %108 = arith.maximumf %106, %107 : vector<16x128xf32>
    %c0_43 = arith.constant 0 : index
    %c0_44 = arith.constant 0 : index
    %109 = vector.load %arg11[%c0_43, %c0_44] : memref<128x256xf32, #tpu.memory_space<vmem>>, vector<128x256xf32>
    %cst_45 = arith.constant dense<0.000000e+00> : vector<16x256xf32>
    %110 = tpu.matmul %108, %109, %cst_45 {dimension_numbers = #tpu.dot_dimension_numbers<[1], [0], [0], [1], [0, 0, 1, 1], [], []>} : vector<16x128xf32>, vector<128x256xf32>, vector<16x256xf32> -> vector<16x256xf32>
    %c0_46 = arith.constant 0 : index
    %c0_47 = arith.constant 0 : index
    %111 = vector.load %arg12[%c0_46, %c0_47] : memref<1x256xf32, #tpu.memory_space<vmem>>, vector<1x256xf32>
    %112 = vector.broadcast %111 : vector<1x256xf32> to vector<16x256xf32>
    %113 = arith.addf %110, %112 : vector<16x256xf32>
    %c0_48 = arith.constant 0 : index
    %c0_49 = arith.constant 0 : index
    %114 = vector.load %arg13[%c0_48, %c0_49] : memref<16x256xf32, #tpu.memory_space<vmem>>, vector<16x256xf32>
    tpu.vector_store %arg13[%c0_48, %c0_49], %113 {strides = array<i32>} : memref<16x256xf32, #tpu.memory_space<vmem>>, vector<16x256xf32>,
    return
  }
  func.func @transform_0(%arg0: i32) -> (i32, i32) {
    %c0_i32 = arith.constant 0 : i32
    %c0_i32_0 = arith.constant 0 : i32
    return %arg0, %c0_i32 : i32, i32
  }
  func.func @transform_1(%arg0: i32) -> (i32, i32) {
    %c0_i32 = arith.constant 0 : i32
    %c0_i32_0 = arith.constant 0 : i32
    %c0_i32_1 = arith.constant 0 : i32
    return %c0_i32, %c0_i32_0 : i32, i32
  }
  func.func @transform_2(%arg0: i32) -> (i32, i32) {
    %c0_i32 = arith.constant 0 : i32
    %c0_i32_0 = arith.constant 0 : i32
    %c0_i32_1 = arith.constant 0 : i32
    return %c0_i32, %c0_i32_0 : i32, i32
  }
  func.func @transform_3(%arg0: i32) -> (i32, i32) {
    %c0_i32 = arith.constant 0 : i32
    %c0_i32_0 = arith.constant 0 : i32
    %c0_i32_1 = arith.constant 0 : i32
    return %c0_i32, %c0_i32_0 : i32, i32
  }
  func.func @transform_4(%arg0: i32) -> (i32, i32) {
    %c0_i32 = arith.constant 0 : i32
    %c0_i32_0 = arith.constant 0 : i32
    %c0_i32_1 = arith.constant 0 : i32
    return %c0_i32, %c0_i32_0 : i32, i32
  }
  func.func @transform_5(%arg0: i32) -> (i32, i32) {
    %c0_i32 = arith.constant 0 : i32
    %c0_i32_0 = arith.constant 0 : i32
    %c0_i32_1 = arith.constant 0 : i32
    return %c0_i32, %c0_i32_0 : i32, i32
  }
  func.func @transform_6(%arg0: i32) -> (i32, i32) {
    %c0_i32 = arith.constant 0 : i32
    %c0_i32_0 = arith.constant 0 : i32
    %c0_i32_1 = arith.constant 0 : i32
    return %c0_i32, %c0_i32_0 : i32, i32
  }
  func.func @transform_7(%arg0: i32) -> (i32, i32) {
    %c0_i32 = arith.constant 0 : i32
    %c0_i32_0 = arith.constant 0 : i32
    %c0_i32_1 = arith.constant 0 : i32
    return %c0_i32, %c0_i32_0 : i32, i32
  }
  func.func @transform_8(%arg0: i32) -> (i32, i32) {
    %c0_i32 = arith.constant 0 : i32
    %c0_i32_0 = arith.constant 0 : i32
    %c0_i32_1 = arith.constant 0 : i32
    return %c0_i32, %c0_i32_0 : i32, i32
  }
  func.func @transform_9(%arg0: i32) -> (i32, i32) {
    %c0_i32 = arith.constant 0 : i32
    %c0_i32_0 = arith.constant 0 : i32
    %c0_i32_1 = arith.constant 0 : i32
    return %c0_i32, %c0_i32_0 : i32, i32
  }
  func.func @transform_10(%arg0: i32) -> (i32, i32) {
    %c0_i32 = arith.constant 0 : i32
    %c0_i32_0 = arith.constant 0 : i32
    %c0_i32_1 = arith.constant 0 : i32
    return %c0_i32, %c0_i32_0 : i32, i32
  }
  func.func @transform_11(%arg0: i32) -> (i32, i32) {
    %c0_i32 = arith.constant 0 : i32
    %c0_i32_0 = arith.constant 0 : i32
    %c0_i32_1 = arith.constant 0 : i32
    return %c0_i32, %c0_i32_0 : i32, i32
  }
  func.func @transform_12(%arg0: i32) -> (i32, i32) {
    %c0_i32 = arith.constant 0 : i32
    %c0_i32_0 = arith.constant 0 : i32
    return %arg0, %c0_i32 : i32, i32
  }
}

</mosaic_0001>

<bundles_post_ra>
// kernel: _lambda_.1
= control target key start
LH: loop header
LB: loop body
LE: loop exit
PB: predicated region body
PF: predicated region fallthrough
CT: control target
= control target key end

     0   :  { %17 = vsyncpa [#allocation3], 0  ;;  %s2623_s0 = inlined_call_operand.vmem [shape: f32[32,24], index: 0, kind: input, shape index: {}]   ;;  %s2624_s1 = inlined_call_operand.vmem [shape: f32[16,16], index: 1, kind: input, shape index: {}]   ;;  %s2625_s2 = inlined_call_operand.vmem [shape: f32[24,128], index: 2, kind: input, shape index: {}]   ;;  %s2626_s3 = inlined_call_operand.vmem [shape: f32[9,128], index: 3, kind: input, shape index: {}]   ;;  %s2627_s4 = inlined_call_operand.hbm [shape: f32[128,384], index: 4, kind: input, shape index: {}]   ;;  %s2628_s5 = inlined_call_operand.vmem [shape: f32[1,384], index: 5, kind: input, shape index: {}]   ;;  %s2629_s6 = inlined_call_operand.hbm [shape: f32[128,128], index: 6, kind: input, shape index: {}]   ;;  %s2630_s7 = inlined_call_operand.hbm [shape: f32[128,128], index: 7, kind: input, shape index: {}]   ;;  %s2631_s8 = inlined_call_operand.hbm [shape: f32[128,128], index: 8, kind: input, shape index: {}]   ;;  %s2632_s9 = inlined_call_operand.hbm [shape: f32[128,128], index: 9, kind: input, shape index: {}]   ;;  %s2633_s10 = inlined_call_operand.hbm [shape: f32[128,256], index: 10, kind: input, shape index: {}]   ;;  %s2634_s11 = inlined_call_operand.vmem [shape: f32[1,256], index: 11, kind: input, shape index: {}]   ;;  %s2635_s12 = inlined_call_operand.vmem [shape: f32[32,256], index: 12, kind: output, shape index: {}]  }
   0x1   :  { %18 = vsyncpa [#allocation5], 0 }
   0x2   :  { %19 = vsyncpa [#allocation8], 0 }
   0x3   :  { %20 = vsyncpa [#allocation11], 0  ;;  %s2387_s21 = smov 0  }
   0x4 LB: > { %s2309_s22 = smov [#allocation4]   ;;  %s1706_s24 = sadd.s32 4294967295, %s2307_s21   ;;  %s2307_s21 = sphi %s2387_s21, %s26_s21  }
   0x5   : > { %s351_s23 = sshll.u32 %s2309_s22, 4  ;;  %p1708_p0 = scmp.ge.s32.totalorder %s2307_s21, 1  ;;  %s352_s23 = int_to_ptr.vmem [resolvable:$true] %s351_s23 }
   0x6   : > { %p314_p1 = scmp.lt.s32.totalorder %s2307_s21, 3  ;;  %p2397_p2 = scmp.eq.s32.totalorder %s1706_s24, 0 }
   0x7   : > { %s2310_s27 = smov [#allocation7]   ;;  %s2311_s30 = smov [#allocation2]  }
   0x8   : > { %p2401_p3 = pnand %p1708_p0, %p314_p1  ;;  %s377_s28 = sshll.u32 %s2310_s27, 4  ;;  %s2407_s28 = int_to_ptr.vmem [resolvable:$true] %s377_s28 }
   0x9   : > { %s335_s13 = sshll.u32 %s2311_s30, 4  ;;  %s2140_s15 = scalar_lea.vmem %s352_s23, 2048  ;;  %s2415_s13 = int_to_ptr.vmem [resolvable:$true] %s335_s13 }
   0xa   : > { %p2061_p4 = pneg %p2401_p3  ;;  %p2141_p7 = scmp.ne.s32.totalorder %s352_s23, %s2140_s15 }
   0xb   : > { %p2148_p10 = scmp.lt.s32.totalorder %s352_s23, %s352_s23  ;;  %p2149_p11 = scmp.lt.s32.totalorder %s2140_s15, %s2140_s15 }
   0xc   : > { %p2411_p5 = pnand %p2397_p2, %p2061_p4 }
   0xd   : > { %p2150_p12 = por %p2149_p11, %p2148_p10 }
   0xe   : > { %p2419_p6 = pneg %p2411_p5 }
  0x10   : > { %p2143_p8 = pnand %p2141_p7, %p2419_p6 }
  0x12   : > { %p2144_p9 = pneg %p2143_p8 }
  0x14   : > { %p2151_p13 = pnand %p2150_p12, %p2144_p9 }
  0x16   : > { %2154 = shalt.err (!%p2151_p13)
}
  0x17   : > { %s2312_s16 = smov 128   ;;  %s2313_s17 = smov 8  }
  0x18   : > { %2067 = dma.hbm_to_vmem [thread:$0]  (!%p2411_p5), %s2629_s6, 2048, %s352_s23, [#allocation5], %s2312_s16, %s2312_s16, %s2313_s17  }
  0x19   : > { %s2166_s20 = scalar_lea.vmem %s2407_s28, 2048  ;;  %p2174_p7 = scmp.lt.s32.totalorder %s2407_s28, %s2407_s28 }
  0x1a   : > { %p2167_p0 = scmp.ne.s32.totalorder %s2407_s28, %s2166_s20  ;;  %p2175_p8 = scmp.lt.s32.totalorder %s2166_s20, %s2166_s20 }
  0x1c   : > { %p2169_p1 = pnand %p2167_p0, %p2419_p6  ;;  %p2176_p9 = por %p2175_p8, %p2174_p7 }
  0x1e   : > { %p2170_p4 = pneg %p2169_p1 }
  0x20   : > { %p2177_p10 = pnand %p2176_p9, %p2170_p4 }
  0x22   : > { %2180 = shalt.err (!%p2177_p10)
}
  0x23   : > { %2073 = dma.hbm_to_vmem [thread:$0]  (!%p2411_p5), %s2631_s8, 2048, %s2407_s28, [#allocation8], %s2312_s16, %s2312_s16, %s2313_s17  }
  0x24   : > { %s2192_s23 = scalar_lea.vmem %s2415_s13, 6144  ;;  %p2200_p0 = scmp.lt.s32.totalorder %s2415_s13, %s2415_s13 }
  0x25   : > { %p2193_p11 = scmp.ne.s32.totalorder %s2415_s13, %s2192_s23  ;;  %p2201_p1 = scmp.lt.s32.totalorder %s2192_s23, %s2192_s23 }
  0x27   : > { %p2195_p12 = pnand %p2193_p11, %p2419_p6  ;;  %p2202_p4 = por %p2201_p1, %p2200_p0 }
  0x29   : > { %p2196_p13 = pneg %p2195_p12 }
  0x2b   : > { %p2203_p7 = pnand %p2202_p4, %p2196_p13 }
  0x2d   : > { %2206 = shalt.err (!%p2203_p7)
}
  0x2e   : > { %s2314_s30 = smov 384   ;;  %s2315_s15 = smov 24  }
  0x2f   : > { %2064 = dma.hbm_to_vmem [thread:$0]  (!%p2411_p5), %s2627_s4, 6144, %s2415_s13, [#allocation3], %s2314_s30, %s2314_s30, %s2315_s15  }
  0x30   : > { %s2316_s28 = smov [#allocation6]   ;;  %s2317_s22 = smov [#allocation9]  }
  0x31   : > { %s364_s20 = sshll.u32 %s2316_s28, 4  ;;  %s390_s27 = sshll.u32 %s2317_s22, 4  ;;  %s365_s20 = int_to_ptr.vmem [resolvable:$true] %s364_s20  ;;  %s391_s27 = int_to_ptr.vmem [resolvable:$true] %s390_s27 }
  0x32   : > { %s2218_s23 = scalar_lea.vmem %s365_s20, 2048  ;;  %p2226_p11 = scmp.lt.s32.totalorder %s365_s20, %s365_s20 }
  0x33   : > { %p2219_p8 = scmp.ne.s32.totalorder %s365_s20, %s2218_s23  ;;  %p2227_p12 = scmp.lt.s32.totalorder %s2218_s23, %s2218_s23 }
  0x35   : > { %p2221_p9 = pnand %p2219_p8, %p2419_p6  ;;  %p2228_p13 = por %p2227_p12, %p2226_p11 }
  0x37   : > { %p2222_p10 = pneg %p2221_p9 }
  0x39   : > { %p2229_p0 = pnand %p2228_p13, %p2222_p10 }
  0x3b   : > { %2232 = shalt.err (!%p2229_p0)
}
  0x3c   : > { %2070 = dma.hbm_to_vmem [thread:$0]  (!%p2411_p5), %s2630_s7, 2048, %s365_s20, [#allocation5], %s2312_s16, %s2312_s16, %s2313_s17  }
  0x3d   : > { %s2244_s15 = scalar_lea.vmem %s391_s27, 2048  ;;  %p2252_p8 = scmp.lt.s32.totalorder %s391_s27, %s391_s27 }
  0x3e   : > { %p2245_p1 = scmp.ne.s32.totalorder %s391_s27, %s2244_s15  ;;  %p2253_p9 = scmp.lt.s32.totalorder %s2244_s15, %s2244_s15 }
  0x40   : > { %p2247_p4 = pnand %p2245_p1, %p2419_p6  ;;  %p2254_p11 = por %p2253_p9, %p2252_p8 }
  0x42   : > { %p2248_p7 = pneg %p2247_p4 }
  0x44   : > { %p2255_p10 = pnand %p2254_p11, %p2248_p7 }
  0x46   : > { %2258 = shalt.err (!%p2255_p10)
}
  0x47   : > { %2076 = dma.hbm_to_vmem [thread:$0]  (!%p2411_p5), %s2632_s9, 2048, %s391_s27, [#allocation8], %s2312_s16, %s2312_s16, %s2313_s17  }
  0x48   : > { %s2318_s28 = smov [#allocation10]  }
  0x49   : > { %s403_s20 = sshll.u32 %s2318_s28, 4  ;;  %s404_s20 = int_to_ptr.vmem [resolvable:$true] %s403_s20 }
  0x4a   : > { %s2270_s22 = scalar_lea.vmem %s404_s20, 4096  ;;  %p2278_p1 = scmp.lt.s32.totalorder %s404_s20, %s404_s20 }
  0x4b   : > { %p2271_p12 = scmp.ne.s32.totalorder %s404_s20, %s2270_s22  ;;  %p2279_p4 = scmp.lt.s32.totalorder %s2270_s22, %s2270_s22 }
  0x4d   : > { %p2273_p13 = pnand %p2271_p12, %p2419_p6  ;;  %p2280_p7 = por %p2279_p4, %p2278_p1 }
  0x4f   : > { %p2274_p0 = pneg %p2273_p13 }
  0x51   : > { %p2281_p8 = pnand %p2280_p7, %p2274_p0 }
  0x53   : > { %2284 = shalt.err (!%p2281_p8)
}
  0x54   : > { %s2319_s23 = smov 256   ;;  %s2320_s13 = smov 16  }
  0x55   : > { %2079 = dma.hbm_to_vmem [thread:$0]  (!%p2411_p5), %s2633_s10, 4096, %s404_s20, [#allocation11], %s2319_s23, %s2319_s23, %s2320_s13  }
  0x56   : > { %431 = sbr.rel (%p2401_p3) target bundleno = 2687 (0xa7f), region = 68 }
  0x5b   : > { %2290 = dma.done.wait (%p2397_p2), [#allocation3], 6144  }
  0x5c   : > { %2292 = vsyncadd (%p2397_p2), [#allocation3], 4294961152 }
  0x5d   : > { %2294 = dma.done.wait (%p2397_p2), [#allocation5], 4096  }
  0x5e   : > { %2296 = vsyncadd (%p2397_p2), [#allocation5], 4294963200 }
  0x5f   : > { %2298 = dma.done.wait (%p2397_p2), [#allocation8], 4096  }
  0x60   : > { %2300 = vsyncadd (%p2397_p2), [#allocation8], 4294963200 }
  0x61   : > { %2302 = dma.done.wait (%p2397_p2), [#allocation11], 4096  }
  0x62   : > { %2304 = vsyncadd (%p2397_p2), [#allocation11], 4294963200  ;;  %s1723_s26 = sshll.u32 %s1706_s24, 1  ;;  %vm518_vm0 = vcmask 195584   ;;  %v513_v0 = vld [vmem:[%s2625_s2 + $0x10] sm:$0xff]  ;;  %v512_v1 = vld [vmem:[%s2625_s2 + $0x8] sm:$0xff]  ;;  %v514_v54 = vlaneseq }
  0x63   : > { %p495_p3 = scmp.lt.s32.totalorder %s1723_s26, 3  ;;  %1839 = vmatprep.subr.mxu0 %v513_v0  ;;  %v648_v3 = vld [vmem:[#allocation2 + $0x170] sm:$0xff]  ;;  %v511_v4 = vld [vmem:[%s2625_s2] sm:$0xff]  ;;  %v647_v5 = vld [vmem:[#allocation2 + $0x168] sm:$0xff]  ;;  %v2321_v53 = vmov 0.0   ;;  %vm900_vm1 = vcmask 130048  }
  0x64   : > { %1840 = vmatpush3.msra.mxu0 %v513_v0  ;;  %v645_v6 = vld [vmem:[#allocation2 + $0x158] sm:$0xff]  ;;  %667 = vmatprep.subr.mxu1 %v648_v3  ;;  %v644_v7 = vld [vmem:[#allocation2 + $0x150] sm:$0xff]  ;;  %v642_v10 = vld [vmem:[#allocation2 + $0x140] sm:$0xff]  ;;  %v2525_v55 = vshrl.u32 %v514_v54, 7 }
  0x65   : > { %s2641_s26 = smov (!%p495_p3, %s1723_s26), 3  ;;  %1841 = vmatprep.subr.mxu0 %v512_v1  ;;  %668 = vmatpush1.msra.mxu1 %v647_v5  ;;  %v649_v9 = vld [vmem:[#allocation2 + $0x178] sm:$0xff]  ;;  %v646_v11 = vld [vmem:[#allocation2 + $0x160] sm:$0xff]  ;;  %v639_v13 = vld [vmem:[#allocation2 + $0x128] sm:$0xff] }
  0x66   : > { %s1724_s29 = sshll.u32 %s2641_s26, 3  ;;  %1842 = vmatpush3.msra.mxu0 %v512_v1  ;;  %669 = vmatprep.subr.mxu1 %v645_v6  ;;  %v641_v12 = vld [vmem:[#allocation2 + $0x138] sm:$0xff]  ;;  %v643_v14 = vld [vmem:[#allocation2 + $0x148] sm:$0xff]  ;;  %v638_v15 = vld [vmem:[#allocation2 + $0x120] sm:$0xff]  ;;  %v2528_v56 = vsub.s32 0, %v2525_v55  ;;  %v2551_v5 = vsub.s32 1, %v2525_v55 }
  0x67   : > { %s498_s17 = scalar_lea.vmem %s2623_s0, %s1724_s29  ;;  %1843 = vmatprep.subr.mxu0 %v511_v4  ;;  %670 = vmatpush1.msra.mxu1 %v644_v7  ;;  %v636_v16 = vld [vmem:[#allocation2 + $0x110] sm:$0xff]  ;;  %v635_v18 = vld [vmem:[#allocation2 + $0x108] sm:$0xff]  ;;  %v633_v19 = vld [vmem:[#allocation2 + $0xf8] sm:$0xff]  ;;  %s1735_s19 = sshll.u32 %s2641_s26, 4 }
  0x68   : > { %v509_v2 = vld [vmem:[%s498_s17] sm:$0xff]  ;;  %v510_v8 = vld [vmem:[%s498_s17 + $0x8] sm:$0xff]  ;;  %1844 = vmatpush3.msra.mxu0 %v511_v4  ;;  %671 = vmatprep.subr.mxu1 %v642_v10  ;;  %v640_v17 = vld [vmem:[#allocation2 + $0x130] sm:$0xff]  ;;  %s505_s28 = scalar_lea.vmem %s2635_s12, %s1735_s19 }
  0x69   : > { %1845 = vmatprep.mubr.msk.f32.mxu0 %vm518_vm0, %v509_v2  ;;  %1848 = vmatprep.subr.mxu0 %v649_v9  ;;  %v637_v20 = vld [vmem:[#allocation2 + $0x118] sm:$0xff]  ;;  %v632_v21 = vld [vmem:[#allocation2 + $0xf0] sm:$0xff]  ;;  %v630_v22 = vld [vmem:[#allocation2 + $0xe0] sm:$0xff] }
  0x6a   : > { %1846 = vmatmul.mubr.msk.f32.vlgmr.msra.gmra.mxu0 %vm518_vm0, %v510_v8  ;;  %672 = vmatpush1.msra.mxu1 %v641_v12  ;;  %v634_v23 = vld [vmem:[#allocation2 + $0x100] sm:$0xff]  ;;  %v629_v24 = vld [vmem:[#allocation2 + $0xd8] sm:$0xff]  ;;  %v627_v25 = vld [vmem:[#allocation2 + $0xc8] sm:$0xff]  ;;  %v662_v8 = vsub.s32 2, %v2525_v55 }
  0x6b   : > { %1849 = vmatpush3.msra.mxu0 %v649_v9  ;;  %673 = vmatprep.subr.mxu1 %v639_v13  ;;  %v631_v26 = vld [vmem:[#allocation2 + $0xe8] sm:$0xff]  ;;  %v626_v27 = vld [vmem:[#allocation2 + $0xc0] sm:$0xff]  ;;  %v624_v28 = vld [vmem:[#allocation2 + $0xb0] sm:$0xff] }
  0x6c   : > { %1850 = vmatprep.subr.mxu0 %v646_v11  ;;  %674 = vmatpush1.msra.mxu1 %v638_v15  ;;  %v628_v29 = vld [vmem:[#allocation2 + $0xd0] sm:$0xff]  ;;  %v623_v30 = vld [vmem:[#allocation2 + $0xa8] sm:$0xff]  ;;  %v621_v31 = vld [vmem:[#allocation2 + $0x98] sm:$0xff] }
  0x6d   : > { %1851 = vmatpush3.msra.mxu0 %v646_v11  ;;  %675 = vmatprep.subr.mxu1 %v636_v16  ;;  %v625_v32 = vld [vmem:[#allocation2 + $0xb8] sm:$0xff]  ;;  %v620_v33 = vld [vmem:[#allocation2 + $0x90] sm:$0xff]  ;;  %v618_v34 = vld [vmem:[#allocation2 + $0x80] sm:$0xff] }
  0x6e   : > { %1852 = vmatprep.subr.mxu0 %v643_v14  ;;  %676 = vmatpush1.msra.mxu1 %v635_v18  ;;  %v622_v35 = vld [vmem:[#allocation2 + $0xa0] sm:$0xff]  ;;  %v617_v36 = vld [vmem:[#allocation2 + $0x78] sm:$0xff]  ;;  %v615_v37 = vld [vmem:[#allocation2 + $0x68] sm:$0xff] }
  0x6f   : > { %1853 = vmatpush3.msra.mxu0 %v643_v14  ;;  %677 = vmatprep.subr.mxu1 %v633_v19  ;;  %v619_v38 = vld [vmem:[#allocation2 + $0x88] sm:$0xff]  ;;  %v614_v39 = vld [vmem:[#allocation2 + $0x60] sm:$0xff]  ;;  %v612_v40 = vld [vmem:[#allocation2 + $0x50] sm:$0xff] }
  0x70   : > { %1854 = vmatprep.subr.mxu0 %v640_v17  ;;  %678 = vmatpush1.msra.mxu1 %v632_v21  ;;  %v616_v41 = vld [vmem:[#allocation2 + $0x70] sm:$0xff]  ;;  %v611_v42 = vld [vmem:[#allocation2 + $0x48] sm:$0xff]  ;;  %v613_v43 = vld [vmem:[#allocation2 + $0x58] sm:$0xff] }
  0x71   : > { %1855 = vmatpush3.msra.mxu0 %v640_v17  ;;  %679 = vmatprep.subr.mxu1 %v630_v22  ;;  %v609_v44 = vld [vmem:[#allocation2 + $0x38] sm:$0xff]  ;;  %v608_v45 = vld [vmem:[#allocation2 + $0x30] sm:$0xff]  ;;  %v610_v46 = vld [vmem:[#allocation2 + $0x40] sm:$0xff] }
  0x72   : > { %1856 = vmatprep.subr.mxu0 %v637_v20  ;;  %680 = vmatpush1.msra.mxu1 %v629_v24  ;;  %v606_v47 = vld [vmem:[#allocation2 + $0x20] sm:$0xff]  ;;  %v605_v48 = vld [vmem:[#allocation2 + $0x18] sm:$0xff]  ;;  %v607_v49 = vld [vmem:[#allocation2 + $0x28] sm:$0xff] }
  0x73   : > { %1857 = vmatpush3.msra.mxu0 %v637_v20  ;;  %681 = vmatprep.subr.mxu1 %v627_v25  ;;  %v603_v50 = vld [vmem:[#allocation2 + $0x8] sm:$0xff]  ;;  %v602_v51 = vld [vmem:[#allocation2] sm:$0xff]  ;;  %v604_v52 = vld [vmem:[#allocation2 + $0x10] sm:$0xff] }
  0x74   : > { %1858 = vmatprep.subr.mxu0 %v634_v23  ;;  %682 = vmatpush1.msra.mxu1 %v626_v27  ;;  %v2533_v57 = vld [vmem:[%s2626_s3] sm:$0xff]  ;;  %v897_v24 = vld [vmem:[%s2624_s1 + $0x8] sm:$0xff] }
  0x75   : > { %1859 = vmatpush3.msra.mxu0 %v634_v23  ;;  %683 = vmatprep.subr.mxu1 %v624_v28  ;;  %v517_v58 = vrot.slane %v2533_v57, %v2528_v56  ;;  %v650_v1 = vld [vmem:[%s2628_s5] sm:$0x7]  ;;  %v1005_v54 = vld [vmem:[#allocation4 + $0x8] sm:$0xff] }
  0x76   : > { %1860 = vmatprep.subr.mxu0 %v631_v26  ;;  %684 = vmatpush1.msra.mxu1 %v623_v30  ;;  %v655_v2 = vrot.slane %v650_v1, %v2528_v56  ;;  %v659_v9 = vrot.slane %v650_v1, %v2551_v5  ;;  %v663_v12 = vrot.slane %v650_v1, %v662_v8  ;;  %v896_v21 = vld [vmem:[%s2624_s1] sm:$0xff] }
  0x77   : > { %1861 = vmatpush3.msra.mxu0 %v631_v26  ;;  %685 = vmatprep.subr.mxu1 %v621_v31 }
  0x78   : > { %1862 = vmatprep.subr.mxu0 %v628_v29  ;;  %686 = vmatpush1.msra.mxu1 %v620_v33 }
  0x79   : > { %1863 = vmatpush3.msra.mxu0 %v628_v29  ;;  %687 = vmatprep.subr.mxu1 %v618_v34 }
  0x7a   : > { %1864 = vmatprep.subr.mxu0 %v625_v32  ;;  %688 = vmatpush1.msra.mxu1 %v617_v36 }
  0x7b   : > { %1865 = vmatpush3.msra.mxu0 %v625_v32  ;;  %689 = vmatprep.subr.mxu1 %v615_v37 }
  0x7c   : > { %1866 = vmatprep.subr.mxu0 %v622_v35  ;;  %690 = vmatpush1.msra.mxu1 %v614_v39  ;;  %v1019_v39 = vld [vmem:[#allocation4 + $0x78] sm:$0xff] }
  0x7d   : > { %1867 = vmatpush3.msra.mxu0 %v622_v35  ;;  %691 = vmatprep.subr.mxu1 %v612_v40  ;;  %v1018_v40 = vld [vmem:[#allocation4 + $0x70] sm:$0xff] }
  0x7e   : > { %1868 = vmatprep.subr.mxu0 %v619_v38  ;;  %692 = vmatpush1.msra.mxu1 %v611_v42  ;;  %v1016_v42 = vld [vmem:[#allocation4 + $0x60] sm:$0xff] }
  0x7f   : > { %1869 = vmatpush3.msra.mxu0 %v619_v38  ;;  %693 = vmatprep.subr.mxu1 %v609_v44  ;;  %v1014_v44 = vld [vmem:[#allocation4 + $0x50] sm:$0xff] }
  0x80   : > { %1870 = vmatprep.subr.mxu0 %v616_v41  ;;  %694 = vmatpush1.msra.mxu1 %v608_v45  ;;  %v1013_v45 = vld [vmem:[#allocation4 + $0x48] sm:$0xff] }
  0x81   : > { %1871 = vmatpush3.msra.mxu0 %v616_v41  ;;  %695 = vmatprep.subr.mxu1 %v606_v47  ;;  %v1017_v41 = vld [vmem:[#allocation4 + $0x68] sm:$0xff]  ;;  %v1011_v47 = vld [vmem:[#allocation4 + $0x38] sm:$0xff] }
  0x82   : > { %1872 = vmatprep.subr.mxu0 %v613_v43  ;;  %696 = vmatpush1.msra.mxu1 %v605_v48  ;;  %v1010_v48 = vld [vmem:[#allocation4 + $0x30] sm:$0xff] }
  0x83   : > { %1873 = vmatpush3.msra.mxu0 %v613_v43  ;;  %697 = vmatprep.subr.mxu1 %v603_v50  ;;  %v1015_v43 = vld [vmem:[#allocation4 + $0x58] sm:$0xff]  ;;  %v1008_v50 = vld [vmem:[#allocation4 + $0x20] sm:$0xff] }
  0x84   : > { %1874 = vmatprep.subr.mxu0 %v610_v46  ;;  %698 = vmatpush1.msra.mxu1 %v602_v51  ;;  %v1007_v51 = vld [vmem:[#allocation4 + $0x18] sm:$0xff] }
  0x85   : > { %1875 = vmatpush3.msra.mxu0 %v610_v46  ;;  %731 = vmatprep.mubr.f32.mxu1 %v2321_v53  ;;  %v1012_v46 = vld [vmem:[#allocation4 + $0x40] sm:$0xff] }
  0x86   : > { %1876 = vmatprep.subr.mxu0 %v607_v49  ;;  %1897 = vmatprep.subr.mxu1 %v1019_v39 }
  0x87   : > { %1877 = vmatpush3.msra.mxu0 %v607_v49  ;;  %v1009_v49 = vld [vmem:[#allocation4 + $0x28] sm:$0xff] }
  0x88   : > { %1878 = vmatprep.subr.mxu0 %v604_v52 }
  0x89   : > { %1879 = vmatpush3.msra.mxu0 %v604_v52  ;;  %v1006_v52 = vld [vmem:[#allocation4 + $0x10] sm:$0xff] }
 0x12a   : > { %v1847_v59 = vpop.f32.mrf.mxu0 }
 0x12b   : > { %v597_v60 = vadd.f32 %v1847_v59, %v517_v58 }
 0x12c   : > { %v591_v61 = vpop.f32.mrf.mxu0 }
 0x12d   : > { %v592_v62 = vadd.f32 %v591_v61, %v517_v58  ;;  %v2539_v0 = vmax.f32 %v597_v60, 0.0  ;;  %v1004_v58 = vld [vmem:[#allocation4] sm:$0xff] }
 0x12f   : > { %v2537_v63 = vmax.f32 %v592_v62, 0.0 }
 0x131   : > { %732 = vmatmul.mubr.f32.vlgmr.msra.gmra.mxu1 %v2537_v63  ;;  %1880 = vmatprep.mubr.f32.mxu0 %v2537_v63 }
 0x132   : > { %1881 = vmatmul.mubr.f32.vlgmr.msra.gmra.mxu0 %v2539_v0  ;;  %737 = vmatprep.mubr.f32.mxu1 %v2321_v53 }
 0x133   : > { %1898 = vmatpush3.msra.mxu1 %v1019_v39  ;;  %v1245_v39 = vld [vmem:[#allocation7 + $0x60] sm:$0xff] }
 0x134   : > { %1899 = vmatprep.subr.mxu1 %v1018_v40 }
 0x135   : > { %738 = vmatmul.mubr.f32.gmra.mxu1 %v2539_v0 }
 0x136   : > { %1900 = vmatpush3.msra.mxu1 %v1018_v40  ;;  %v1244_v40 = vld [vmem:[#allocation7 + $0x58] sm:$0xff] }
 0x137   : > { %1901 = vmatprep.subr.mxu1 %v1017_v41 }
 0x138   : > { %1902 = vmatpush3.msra.mxu1 %v1017_v41  ;;  %v1243_v41 = vld [vmem:[#allocation7 + $0x50] sm:$0xff] }
 0x139   : > { %1903 = vmatprep.subr.mxu1 %v1016_v42 }
 0x13a   : > { %1904 = vmatpush3.msra.mxu1 %v1016_v42  ;;  %v1242_v42 = vld [vmem:[#allocation7 + $0x48] sm:$0xff] }
 0x13b   : > { %1905 = vmatprep.subr.mxu1 %v1015_v43 }
 0x13c   : > { %1906 = vmatpush3.msra.mxu1 %v1015_v43  ;;  %v1241_v43 = vld [vmem:[#allocation7 + $0x40] sm:$0xff] }
 0x13d   : > { %1907 = vmatprep.subr.mxu1 %v1014_v44 }
 0x13e   : > { %1908 = vmatpush3.msra.mxu1 %v1014_v44  ;;  %v1240_v44 = vld [vmem:[#allocation7 + $0x38] sm:$0xff] }
 0x13f   : > { %1909 = vmatprep.subr.mxu1 %v1013_v45 }
 0x140   : > { %1910 = vmatpush3.msra.mxu1 %v1013_v45  ;;  %v1239_v45 = vld [vmem:[#allocation7 + $0x30] sm:$0xff] }
 0x141   : > { %1911 = vmatprep.subr.mxu1 %v1012_v46 }
 0x142   : > { %1912 = vmatpush3.msra.mxu1 %v1012_v46  ;;  %v1238_v46 = vld [vmem:[#allocation7 + $0x28] sm:$0xff] }
 0x143   : > { %1913 = vmatprep.subr.mxu1 %v1011_v47 }
 0x144   : > { %1914 = vmatpush3.msra.mxu1 %v1011_v47  ;;  %v1237_v47 = vld [vmem:[#allocation7 + $0x20] sm:$0xff] }
 0x145   : > { %1915 = vmatprep.subr.mxu1 %v1010_v48 }
 0x146   : > { %1916 = vmatpush3.msra.mxu1 %v1010_v48 }
 0x147   : > { %1917 = vmatprep.subr.mxu1 %v1009_v49 }
 0x148   : > { %1918 = vmatpush3.msra.mxu1 %v1009_v49 }
 0x149   : > { %1919 = vmatprep.subr.mxu1 %v1008_v50 }
 0x14a   : > { %1920 = vmatpush3.msra.mxu1 %v1008_v50 }
 0x14b   : > { %1921 = vmatprep.subr.mxu1 %v1007_v51 }
 0x14c   : > { %1922 = vmatpush3.msra.mxu1 %v1007_v51 }
 0x14d   : > { %1923 = vmatprep.subr.mxu1 %v1006_v52 }
 0x14e   : > { %1924 = vmatpush3.msra.mxu1 %v1006_v52 }
 0x14f   : > { %1925 = vmatprep.subr.mxu1 %v1005_v54 }
 0x150   : > { %1926 = vmatpush3.msra.mxu1 %v1005_v54 }
 0x151   : > { %1927 = vmatprep.subr.mxu1 %v1004_v58 }
 0x152   : > { %1928 = vmatpush3.msra.mxu1 %v1004_v58 }
 0x1f1   : > { %v733_v3 = vpop.f32.mrf.mxu1 }
 0x1f2   : > { %v734_v4 = vadd.f32 %v733_v3, %v655_v2  ;;  %v1882_v14 = vpop.f32.mrf.mxu0 }
 0x1f3   : > { %v735_v6 = vpop.f32.mrf.mxu1  ;;  %v816_v15 = vadd.f32 %v1882_v14, %v663_v12  ;;  %v1151_v14 = vld [vmem:[#allocation6 + $0x78] sm:$0xff] }
 0x1f4   : > { %1887 = vmatprep.mubr.f32.mxu0 %v734_v4  ;;  %v736_v13 = vadd.f32 %v735_v6, %v659_v9  ;;  %v810_v16 = vpop.f32.mrf.mxu0  ;;  %v1023_v6 = vrot.slane %v2533_v57, %v2551_v5 }
 0x1f5   : > { %v739_v7 = vpop.f32.mrf.mxu1  ;;  %v811_v18 = vadd.f32 %v810_v16, %v663_v12  ;;  %v1149_v16 = vld [vmem:[#allocation6 + $0x68] sm:$0xff] }
 0x1f6   : > { %v740_v17 = vadd.f32 %v739_v7, %v655_v2 }
 0x1f7   : > { %v741_v10 = vpop.f32.mrf.mxu1 }
 0x1f8   : > { %v742_v11 = vadd.f32 %v741_v10, %v659_v9 }
 0x1fa   : > { %1883 = vmatprep.subr.mxu0 %v742_v11 }
 0x1fb   : > { %1884 = vmatpush3.xpose.msra.mxu0 %v742_v11 }
 0x1fc   : > { %1885 = vmatprep.subr.mxu0 %v736_v13 }
 0x1ff   : > { %1886 = vmatpush3.xpose.msra.mxu0 %v736_v13 }
 0x200   : > { %1890 = vmatprep.subr.mxu0 %v816_v15 }
 0x202   : > { %1888 = vmatmul.mubr.f32.vlgmr.msra.gmra.mxu0 %v740_v17 }
 0x203   : > { %1891 = vmatpush3.msra.mxu0 %v816_v15  ;;  %v1150_v15 = vld [vmem:[#allocation6 + $0x70] sm:$0xff] }
 0x204   : > { %1892 = vmatprep.subr.mxu0 %v811_v18 }
 0x205   : > { %1893 = vmatpush3.msra.mxu0 %v811_v18 }
 0x206   : > { %1932 = vmatprep.subr.mxu0 %v1151_v14 }
 0x2c2   : > { %v1889_v19 = vpop.f32.mrf.mxu0 }
 0x2c3   : > { %v895_v22 = vmul.f32 0.088388346, %v1889_v19 }
 0x2c4   : > { %v885_v20 = vpop.f32.mrf.mxu0 }
 0x2c5   : > { %v894_v23 = vmul.f32 0.088388346, %v885_v20  ;;  %v899_v27 = vadd.f32 %v897_v24, %v895_v22  ;;  %v1147_v24 = vld [vmem:[#allocation6 + $0x58] sm:$0xff] }
 0x2c7   : > { %v898_v25 = vadd.f32 %v896_v21, %v894_v23  ;;  %v904_v28 = vsel %vm900_vm1, %v899_v27, -inf  ;;  %v1148_v23 = vld [vmem:[#allocation6 + $0x60] sm:$0xff] }
 0x2c9   : > { %v901_v26 = vsel %vm900_vm1, %v898_v25, -inf }
 0x2ca   : > { %902 = vmax.xlane.f32.xlu0 %v901_v26  ;;  %v1145_v26 = vld [vmem:[#allocation6 + $0x48] sm:$0xff] }
 0x2ce   : > { %905 = vmax.xlane.f32.xlu0 %v904_v28  ;;  %v1143_v28 = vld [vmem:[#allocation6 + $0x38] sm:$0xff] }
 0x353   : > { %v903_v29 = vpop.xlane.xlu0 %902 }
 0x354   : > { %v907_v30 = vsub.f32 %v898_v25, %v903_v29  ;;  %v1146_v25 = vld [vmem:[#allocation6 + $0x50] sm:$0xff] }
 0x355   : > { %v1142_v29 = vld [vmem:[#allocation6 + $0x30] sm:$0xff] }
 0x356   : > { %v909_v31 = vmul.f32 1.442695, %v907_v30  ;;  %v1141_v30 = vld [vmem:[#allocation6 + $0x28] sm:$0xff] }
 0x357   : > { %v906_v32 = vpop.xlane.xlu0 %905 }
 0x358   : > { %2113 = vpow2.f32 %v909_v31  ;;  %v908_v33 = vsub.f32 %v899_v27, %v906_v32  ;;  %v1144_v27 = vld [vmem:[#allocation6 + $0x40] sm:$0xff]  ;;  %v1139_v32 = vld [vmem:[#allocation6 + $0x18] sm:$0xff] }
 0x359   : > { %v1140_v31 = vld [vmem:[#allocation6 + $0x20] sm:$0xff] }
 0x35a   : > { %v911_v34 = vmul.f32 1.442695, %v908_v33  ;;  %v1138_v33 = vld [vmem:[#allocation6 + $0x10] sm:$0xff] }
 0x35c   : > { %2115 = vpow2.f32 %v911_v34  ;;  %v1137_v34 = vld [vmem:[#allocation6 + $0x8] sm:$0xff] }
 0x365   : > { %v2114_v35 = vpop.eup %2113 }
 0x366   : > { %1894 = vmatprep.mubr.msk.f32.mxu0 %vm900_vm1, %v2114_v35  ;;  %v913_v36 = vsel %vm900_vm1, %v2114_v35, 0.0  ;;  %v1136_v35 = vld [vmem:[#allocation6] sm:$0xff] }
 0x367   : > { %914 = vadd.xlane.f32.xlu1 %v913_v36  ;;  %v1248_v36 = vld [vmem:[#allocation7 + $0x78] sm:$0xff] }
 0x368   : > { %1967 = vmatprep.subr.mxu1 %v1248_v36 }
 0x369   : > { %v2116_v37 = vpop.eup %2115 }
 0x36a   : > { %1895 = vmatmul.mubr.msk.f32.vlgmr.msra.gmra.mxu0 %vm900_vm1, %v2116_v37  ;;  %v916_v38 = vsel %vm900_vm1, %v2116_v37, 0.0  ;;  %v1247_v37 = vld [vmem:[#allocation7 + $0x70] sm:$0xff] }
 0x36b   : > { %917 = vadd.xlane.f32.xlu1 %v916_v38  ;;  %1933 = vmatpush3.msra.mxu0 %v1151_v14  ;;  %v1246_v38 = vld [vmem:[#allocation7 + $0x68] sm:$0xff] }
 0x36c   : > { %1934 = vmatprep.subr.mxu0 %v1150_v15 }
 0x36d   : > { %1935 = vmatpush3.msra.mxu0 %v1150_v15 }
 0x36e   : > { %1936 = vmatprep.subr.mxu0 %v1149_v16 }
 0x36f   : > { %1937 = vmatpush3.msra.mxu0 %v1149_v16 }
 0x370   : > { %1938 = vmatprep.subr.mxu0 %v1148_v23 }
 0x371   : > { %1939 = vmatpush3.msra.mxu0 %v1148_v23 }
 0x372   : > { %1940 = vmatprep.subr.mxu0 %v1147_v24 }
 0x373   : > { %1941 = vmatpush3.msra.mxu0 %v1147_v24 }
 0x374   : > { %1942 = vmatprep.subr.mxu0 %v1146_v25 }
 0x375   : > { %1943 = vmatpush3.msra.mxu0 %v1146_v25 }
 0x376   : > { %1944 = vmatprep.subr.mxu0 %v1145_v26 }
 0x377   : > { %1945 = vmatpush3.msra.mxu0 %v1145_v26  ;;  %v1381_v26 = vld [vmem:[#allocation9 + $0x78] sm:$0xff] }
 0x378   : > { %1946 = vmatprep.subr.mxu0 %v1144_v27 }
 0x379   : > { %1947 = vmatpush3.msra.mxu0 %v1144_v27  ;;  %v1380_v27 = vld [vmem:[#allocation9 + $0x70] sm:$0xff] }
 0x37a   : > { %1948 = vmatprep.subr.mxu0 %v1143_v28 }
 0x37b   : > { %1949 = vmatpush3.msra.mxu0 %v1143_v28 }
 0x37c   : > { %1950 = vmatprep.subr.mxu0 %v1142_v29 }
 0x37d   : > { %1951 = vmatpush3.msra.mxu0 %v1142_v29 }
 0x37e   : > { %1952 = vmatprep.subr.mxu0 %v1141_v30 }
 0x37f   : > { %1953 = vmatpush3.msra.mxu0 %v1141_v30 }
 0x380   : > { %1954 = vmatprep.subr.mxu0 %v1140_v31 }
 0x381   : > { %1955 = vmatpush3.msra.mxu0 %v1140_v31 }
 0x382   : > { %1956 = vmatprep.subr.mxu0 %v1139_v32 }
 0x383   : > { %1957 = vmatpush3.msra.mxu0 %v1139_v32 }
 0x384   : > { %1958 = vmatprep.subr.mxu0 %v1138_v33 }
 0x385   : > { %1959 = vmatpush3.msra.mxu0 %v1138_v33 }
 0x386   : > { %1960 = vmatprep.subr.mxu0 %v1137_v34 }
 0x387   : > { %1961 = vmatpush3.msra.mxu0 %v1137_v34 }
 0x388   : > { %1962 = vmatprep.subr.mxu0 %v1136_v35 }
 0x389   : > { %1963 = vmatpush3.msra.mxu0 %v1136_v35 }
 0x38a   : > { %2002 = vmatprep.subr.mxu0 %v1381_v26 }
 0x3f0   : > { %v915_v59 = vpop.xlane.xlu1 %914 }
 0x3f1   : > { %2117 = vrcp.f32 %v915_v59  ;;  %v1127_v59 = vrot.slane %v2533_v57, %v662_v8  ;;  %v1234_v8 = vld [vmem:[#allocation7 + $0x8] sm:$0xff] }
 0x3f4   : > { %v918_v60 = vpop.xlane.xlu1 %917 }
 0x3f5   : > { %2119 = vrcp.f32 %v918_v60  ;;  %v1132_v60 = vsub.s32 3, %v2525_v55 }
 0x3fe   : > { %v2118_v62 = vpop.eup %2117 }
 0x402   : > { %v2120_v2 = vpop.eup %2119 }
 0x42a   : > { %v1896_v61 = vpop.f32.mrf.mxu0 }
 0x42b   : > { %v1003_v4 = vmul.f32 %v2120_v2, %v1896_v61  ;;  %v1133_v2 = vrot.slane %v2533_v57, %v1132_v60  ;;  %v1488_v60 = vld [vmem:[#allocation10 + $0xc8] sm:$0xff] }
 0x42c   : > { %v991_v1 = vpop.f32.mrf.mxu0 }
 0x42d   : > { %v1002_v3 = vmul.f32 %v2118_v62, %v991_v1 }
 0x42f   : > { %1929 = vmatprep.mubr.f32.mxu1 %v1002_v3 }
 0x430   : > { %1930 = vmatmul.mubr.f32.vlgmr.msra.gmra.mxu1 %v1003_v4 }
 0x431   : > { %1968 = vmatpush3.msra.mxu1 %v1248_v36  ;;  %v1379_v36 = vld [vmem:[#allocation9 + $0x68] sm:$0xff] }
 0x432   : > { %1969 = vmatprep.subr.mxu1 %v1247_v37 }
 0x433   : > { %1970 = vmatpush3.msra.mxu1 %v1247_v37  ;;  %v1378_v37 = vld [vmem:[#allocation9 + $0x60] sm:$0xff] }
 0x434   : > { %1971 = vmatprep.subr.mxu1 %v1246_v38 }
 0x435   : > { %1972 = vmatpush3.msra.mxu1 %v1246_v38  ;;  %v1377_v38 = vld [vmem:[#allocation9 + $0x58] sm:$0xff] }
 0x436   : > { %1973 = vmatprep.subr.mxu1 %v1245_v39 }
 0x437   : > { %1974 = vmatpush3.msra.mxu1 %v1245_v39  ;;  %v1376_v39 = vld [vmem:[#allocation9 + $0x50] sm:$0xff] }
 0x438   : > { %1975 = vmatprep.subr.mxu1 %v1244_v40 }
 0x439   : > { %1976 = vmatpush3.msra.mxu1 %v1244_v40  ;;  %v1375_v40 = vld [vmem:[#allocation9 + $0x48] sm:$0xff] }
 0x43a   : > { %1977 = vmatprep.subr.mxu1 %v1243_v41 }
 0x43b   : > { %1978 = vmatpush3.msra.mxu1 %v1243_v41  ;;  %v1374_v41 = vld [vmem:[#allocation9 + $0x40] sm:$0xff] }
 0x43c   : > { %1979 = vmatprep.subr.mxu1 %v1242_v42 }
 0x43d   : > { %1980 = vmatpush3.msra.mxu1 %v1242_v42  ;;  %v1373_v42 = vld [vmem:[#allocation9 + $0x38] sm:$0xff] }
 0x43e   : > { %1981 = vmatprep.subr.mxu1 %v1241_v43 }
 0x43f   : > { %1982 = vmatpush3.msra.mxu1 %v1241_v43  ;;  %v1372_v43 = vld [vmem:[#allocation9 + $0x30] sm:$0xff] }
 0x440   : > { %1983 = vmatprep.subr.mxu1 %v1240_v44 }
 0x441   : > { %1984 = vmatpush3.msra.mxu1 %v1240_v44  ;;  %v1371_v44 = vld [vmem:[#allocation9 + $0x28] sm:$0xff] }
 0x442   : > { %1985 = vmatprep.subr.mxu1 %v1239_v45 }
 0x443   : > { %1986 = vmatpush3.msra.mxu1 %v1239_v45  ;;  %v1370_v45 = vld [vmem:[#allocation9 + $0x20] sm:$0xff] }
 0x444   : > { %1987 = vmatprep.subr.mxu1 %v1238_v46 }
 0x445   : > { %1988 = vmatpush3.msra.mxu1 %v1238_v46  ;;  %v1369_v46 = vld [vmem:[#allocation9 + $0x18] sm:$0xff] }
 0x446   : > { %1989 = vmatprep.subr.mxu1 %v1237_v47 }
 0x447   : > { %1990 = vmatpush3.msra.mxu1 %v1237_v47  ;;  %v1368_v47 = vld [vmem:[#allocation9 + $0x10] sm:$0xff] }
 0x4f0   : > { %v1931_v7 = vpop.f32.mrf.mxu1 }
 0x4f1   : > { %v1096_v9 = vadd.f32 %v1931_v7, %v1023_v6 }
 0x4f2   : > { %v1090_v10 = vpop.f32.mrf.mxu1 }
 0x4f3   : > { %v1091_v11 = vadd.f32 %v1090_v10, %v1023_v6  ;;  %v1100_v12 = vadd.f32 %v1096_v9, %v2539_v0  ;;  %v1236_v9 = vld [vmem:[#allocation7 + $0x18] sm:$0xff]  ;;  %v1235_v10 = vld [vmem:[#allocation7 + $0x10] sm:$0xff] }
 0x4f4   : > { %1991 = vmatprep.subr.mxu1 %v1236_v9 }
 0x4f5   : > { %1103 = vadd.xlane.f32.xlu1 %v1100_v12  ;;  %v1099_v13 = vadd.f32 %v1091_v11, %v2537_v63  ;;  %1992 = vmatpush3.msra.mxu1 %v1236_v9  ;;  %v1233_v11 = vld [vmem:[#allocation7] sm:$0xff] }
 0x4f6   : > { %1993 = vmatprep.subr.mxu1 %v1235_v10  ;;  %v1479_v9 = vld [vmem:[#allocation10 + $0x80] sm:$0xff] }
 0x4f7   : > { %1101 = vadd.xlane.f32.xlu0 %v1099_v13  ;;  %1994 = vmatpush3.msra.mxu1 %v1235_v10  ;;  %v1478_v10 = vld [vmem:[#allocation10 + $0x78] sm:$0xff] }
 0x4f8   : > { %1995 = vmatprep.subr.mxu1 %v1234_v8 }
 0x4f9   : > { %1996 = vmatpush3.msra.mxu1 %v1234_v8  ;;  %v1477_v8 = vld [vmem:[#allocation10 + $0x70] sm:$0xff] }
 0x4fa   : > { %1997 = vmatprep.subr.mxu1 %v1233_v11 }
 0x4fb   : > { %1998 = vmatpush3.msra.mxu1 %v1233_v11  ;;  %v1476_v11 = vld [vmem:[#allocation10 + $0x68] sm:$0xff] }
 0x57e   : > { %v1104_v17 = vpop.xlane.xlu1 %1103 }
 0x57f   : > { %v1107_v18 = vmul.f32 0.0078125, %v1104_v17 }
 0x580   : > { %v1102_v19 = vpop.xlane.xlu0 %1101 }
 0x581   : > { %v2573_v20 = vsub.f32 %v1100_v12, %v1107_v18  ;;  %v1106_v21 = vmul.f32 0.0078125, %v1102_v19  ;;  %v1154_v12 = vsub.s32 4, %v2525_v55 }
 0x583   : > { %v2575_v0 = vsub.f32 %v1099_v13, %v1106_v21  ;;  %v1111_v63 = vmul.f32 %v2573_v20, %v2573_v20  ;;  %v1155_v13 = vrot.slane %v2533_v57, %v1154_v12  ;;  %v1475_v12 = vld [vmem:[#allocation10 + $0x60] sm:$0xff] }
 0x585   : > { %1114 = vadd.xlane.f32.xlu1 %v1111_v63  ;;  %v1110_v22 = vmul.f32 %v2575_v0, %v2575_v0 }
 0x587   : > { %1112 = vadd.xlane.f32.xlu0 %v1110_v22 }
 0x60e   : > { %v1115_v48 = vpop.xlane.xlu1 %1114 }
 0x60f   : > { %v1117_v49 = vmul.f32 0.0078125, %v1115_v48  ;;  %v1367_v48 = vld [vmem:[#allocation9 + $0x8] sm:$0xff] }
 0x610   : > { %v1113_v50 = vpop.xlane.xlu0 %1112 }
 0x611   : > { %v1119_v51 = vadd.f32 1e-05, %v1117_v49  ;;  %v1116_v52 = vmul.f32 0.0078125, %v1113_v50  ;;  %v1366_v49 = vld [vmem:[#allocation9] sm:$0xff]  ;;  %v1494_v50 = vld [vmem:[#allocation10 + $0xf8] sm:$0xff] }
 0x612   : > { %1507 = vmatprep.subr.mxu1 %v1494_v50 }
 0x613   : > { %2121 = vrsqrt.f32 %v1119_v51  ;;  %v1118_v54 = vadd.f32 1e-05, %v1116_v52  ;;  %v1493_v51 = vld [vmem:[#allocation10 + $0xf0] sm:$0xff]  ;;  %v1492_v52 = vld [vmem:[#allocation10 + $0xe8] sm:$0xff] }
 0x615   : > { %2123 = vrsqrt.f32 %v1118_v54  ;;  %v1491_v54 = vld [vmem:[#allocation10 + $0xe0] sm:$0xff] }
 0x620   : > { %v2122_v58 = vpop.eup %2121 }
 0x621   : > { %v1123_v61 = vmul.f32 %v2122_v58, %v2573_v20  ;;  %v1251_v20 = vsub.s32 5, %v2525_v55  ;;  %v1490_v58 = vld [vmem:[#allocation10 + $0xd8] sm:$0xff] }
 0x622   : > { %v2124_v62 = vpop.eup %2123 }
 0x623   : > { %v1122_v1 = vmul.f32 %v2124_v62, %v2575_v0  ;;  %v1129_v3 = vmul.f32 %v1127_v59, %v1123_v61  ;;  %v1252_v21 = vrot.slane %v2533_v57, %v1251_v20  ;;  %v1487_v61 = vld [vmem:[#allocation10 + $0xc0] sm:$0xff]  ;;  %v1486_v62 = vld [vmem:[#allocation10 + $0xb8] sm:$0xff] }
 0x625   : > { %v1128_v4 = vmul.f32 %v1127_v59, %v1122_v1  ;;  %v1135_v7 = vadd.f32 %v1133_v2, %v1129_v3  ;;  %v1489_v59 = vld [vmem:[#allocation10 + $0xd0] sm:$0xff]  ;;  %v1483_v3 = vld [vmem:[#allocation10 + $0xa0] sm:$0xff] }
 0x626   : > { %v1485_v1 = vld [vmem:[#allocation10 + $0xb0] sm:$0xff] }
 0x627   : > { %v1134_v6 = vadd.f32 %v1133_v2, %v1128_v4  ;;  %v1484_v2 = vld [vmem:[#allocation10 + $0xa8] sm:$0xff]  ;;  %v1482_v4 = vld [vmem:[#allocation10 + $0x98] sm:$0xff] }
 0x629   : > { %1964 = vmatprep.mubr.f32.mxu0 %v1134_v6 }
 0x62a   : > { %1965 = vmatmul.mubr.f32.vlgmr.msra.gmra.mxu0 %v1135_v7 }
 0x62b   : > { %2003 = vmatpush3.msra.mxu0 %v1381_v26 }
 0x62c   : > { %2004 = vmatprep.subr.mxu0 %v1380_v27 }
 0x62d   : > { %2005 = vmatpush3.msra.mxu0 %v1380_v27 }
 0x62e   : > { %2006 = vmatprep.subr.mxu0 %v1379_v36 }
 0x62f   : > { %2007 = vmatpush3.msra.mxu0 %v1379_v36 }
 0x630   : > { %2008 = vmatprep.subr.mxu0 %v1378_v37 }
 0x631   : > { %2009 = vmatpush3.msra.mxu0 %v1378_v37 }
 0x632   : > { %2010 = vmatprep.subr.mxu0 %v1377_v38 }
 0x633   : > { %2011 = vmatpush3.msra.mxu0 %v1377_v38  ;;  %v1469_v38 = vld [vmem:[#allocation10 + $0x30] sm:$0xff] }
 0x634   : > { %2012 = vmatprep.subr.mxu0 %v1376_v39 }
 0x635   : > { %2013 = vmatpush3.msra.mxu0 %v1376_v39  ;;  %v1467_v39 = vld [vmem:[#allocation10 + $0x20] sm:$0xff] }
 0x636   : > { %2014 = vmatprep.subr.mxu0 %v1375_v40 }
 0x637   : > { %2015 = vmatpush3.msra.mxu0 %v1375_v40  ;;  %v1465_v40 = vld [vmem:[#allocation10 + $0x10] sm:$0xff] }
 0x638   : > { %2016 = vmatprep.subr.mxu0 %v1374_v41 }
 0x639   : > { %2017 = vmatpush3.msra.mxu0 %v1374_v41 }
 0x63a   : > { %2018 = vmatprep.subr.mxu0 %v1373_v42 }
 0x63b   : > { %2019 = vmatpush3.msra.mxu0 %v1373_v42  ;;  %v1732_v42 = vld [vmem:[%s2626_s3 + $0x8] ss:$0 sm:$0xff] }
 0x63c   : > { %2020 = vmatprep.subr.mxu0 %v1372_v43 }
 0x63d   : > { %2021 = vmatpush3.msra.mxu0 %v1372_v43 }
 0x63e   : > { %2022 = vmatprep.subr.mxu0 %v1371_v44 }
 0x63f   : > { %2023 = vmatpush3.msra.mxu0 %v1371_v44 }
 0x640   : > { %2024 = vmatprep.subr.mxu0 %v1370_v45 }
 0x641   : > { %2025 = vmatpush3.msra.mxu0 %v1370_v45 }
 0x642   : > { %2026 = vmatprep.subr.mxu0 %v1369_v46 }
 0x643   : > { %2027 = vmatpush3.msra.mxu0 %v1369_v46 }
 0x644   : > { %2028 = vmatprep.subr.mxu0 %v1368_v47 }
 0x645   : > { %2029 = vmatpush3.msra.mxu0 %v1368_v47 }
 0x646   : > { %2030 = vmatprep.subr.mxu0 %v1367_v48 }
 0x647   : > { %2031 = vmatpush3.msra.mxu0 %v1367_v48  ;;  %v1495_v48 = vld [vmem:[%s2634_s11] sm:$0x3] }
 0x648   : > { %2032 = vmatprep.subr.mxu0 %v1366_v49  ;;  %v1504_v50 = vrot.slane %v1495_v48, %v2551_v5 }
 0x649   : > { %2033 = vmatpush3.msra.mxu0 %v1366_v49  ;;  %v1500_v49 = vrot.slane %v1495_v48, %v2528_v56 }
 0x6ea   : > { %v1966_v14 = vpop.f32.mrf.mxu0 }
 0x6eb   : > { %v1228_v15 = vadd.f32 %v1966_v14, %v1155_v13  ;;  %v1473_v14 = vld [vmem:[#allocation10 + $0x50] sm:$0xff] }
 0x6ec   : > { %v1222_v16 = vpop.f32.mrf.mxu0 }
 0x6ed   : > { %v1223_v17 = vadd.f32 %v1222_v16, %v1155_v13  ;;  %v1232_v19 = vmax.f32 %v1228_v15, 0.0  ;;  %v1474_v13 = vld [vmem:[#allocation10 + $0x58] sm:$0xff]  ;;  %v1472_v15 = vld [vmem:[#allocation10 + $0x48] sm:$0xff]  ;;  %v1471_v16 = vld [vmem:[#allocation10 + $0x40] sm:$0xff] }
 0x6ef   : > { %v1231_v18 = vmax.f32 %v1223_v17, 0.0  ;;  %v1470_v17 = vld [vmem:[#allocation10 + $0x38] sm:$0xff] }
 0x6f1   : > { %1999 = vmatprep.mubr.f32.mxu1 %v1231_v18 }
 0x6f2   : > { %2000 = vmatmul.mubr.f32.vlgmr.msra.gmra.mxu1 %v1232_v19 }
 0x6f3   : > { %1571 = vmatprep.mubr.f32.mxu1 %v2321_v53  ;;  %1508 = vmatpush1.msra.mxu1 %v1493_v51 }
 0x6f4   : > { %1509 = vmatprep.subr.mxu1 %v1492_v52 }
 0x6f5   : > { %1510 = vmatpush1.msra.mxu1 %v1491_v54 }
 0x6f6   : > { %1511 = vmatprep.subr.mxu1 %v1490_v58 }
 0x6f7   : > { %1512 = vmatpush1.msra.mxu1 %v1489_v59 }
 0x6f8   : > { %1513 = vmatprep.subr.mxu1 %v1488_v60 }
 0x6f9   : > { %1514 = vmatpush1.msra.mxu1 %v1487_v61 }
 0x6fa   : > { %1515 = vmatprep.subr.mxu1 %v1486_v62 }
 0x6fb   : > { %1516 = vmatpush1.msra.mxu1 %v1485_v1 }
 0x6fc   : > { %1517 = vmatprep.subr.mxu1 %v1484_v2 }
 0x6fd   : > { %1518 = vmatpush1.msra.mxu1 %v1483_v3 }
 0x6fe   : > { %1519 = vmatprep.subr.mxu1 %v1482_v4 }
 0x7b2   : > { %v2001_v0 = vpop.f32.mrf.mxu1 }
 0x7b3   : > { %v1325_v63 = vadd.f32 %v2001_v0, %v1252_v21 }
 0x7b4   : > { %v1319_v22 = vpop.f32.mrf.mxu1 }
 0x7b5   : > { %v1320_v23 = vadd.f32 %v1319_v22, %v1252_v21  ;;  %v1329_v24 = vadd.f32 %v1325_v63, %v1135_v7  ;;  %v1480_v7 = vld [vmem:[#allocation10 + $0x88] sm:$0xff]  ;;  %v1354_v22 = vsub.s32 6, %v2525_v55 }
 0x7b7   : > { %1332 = vadd.xlane.f32.xlu1 %v1329_v24  ;;  %v1328_v25 = vadd.f32 %v1320_v23, %v1134_v6  ;;  %v1481_v6 = vld [vmem:[#allocation10 + $0x90] sm:$0xff]  ;;  %v1360_v23 = vsub.s32 7, %v2525_v55  ;;  %v1468_v55 = vld [vmem:[#allocation10 + $0x28] sm:$0xff] }
 0x7b8   : > { %1520 = vmatpush1.msra.mxu1 %v1481_v6 }
 0x7b9   : > { %1330 = vadd.xlane.f32.xlu0 %v1328_v25  ;;  %1521 = vmatprep.subr.mxu1 %v1480_v7 }
 0x7ba   : > { %1522 = vmatpush1.msra.mxu1 %v1479_v9 }
 0x7bb   : > { %1523 = vmatprep.subr.mxu1 %v1478_v10 }
 0x7bc   : > { %1524 = vmatpush1.msra.mxu1 %v1477_v8 }
 0x7bd   : > { %1525 = vmatprep.subr.mxu1 %v1476_v11 }
 0x7be   : > { %1526 = vmatpush1.msra.mxu1 %v1475_v12 }
 0x7bf   : > { %1527 = vmatprep.subr.mxu1 %v1474_v13 }
 0x7c0   : > { %1528 = vmatpush1.msra.mxu1 %v1473_v14 }
 0x7c1   : > { %1529 = vmatprep.subr.mxu1 %v1472_v15 }
 0x7c2   : > { %1530 = vmatpush1.msra.mxu1 %v1471_v16 }
 0x7c3   : > { %1531 = vmatprep.subr.mxu1 %v1470_v17 }
 0x7c4   : > { %1532 = vmatpush1.msra.mxu1 %v1469_v38 }
 0x7c5   : > { %1533 = vmatprep.subr.mxu1 %v1468_v55 }
 0x7c6   : > { %1534 = vmatpush1.msra.mxu1 %v1467_v39 }
 0x840   : > { %v1333_v28 = vpop.xlane.xlu1 %1332 }
 0x841   : > { %v1335_v29 = vmul.f32 0.0078125, %v1333_v28  ;;  %v1361_v28 = vrot.slane %v2533_v57, %v1360_v23 }
 0x842   : > { %v1331_v30 = vpop.xlane.xlu0 %1330 }
 0x843   : > { %v2593_v31 = vsub.f32 %v1329_v24, %v1335_v29  ;;  %v1334_v32 = vmul.f32 0.0078125, %v1331_v30  ;;  %v1355_v24 = vrot.slane %v2533_v57, %v1354_v22  ;;  %v1464_v57 = vld [vmem:[#allocation10 + $0x8] sm:$0xff] }
 0x845   : > { %v2595_v33 = vsub.f32 %v1328_v25, %v1334_v32  ;;  %v1339_v34 = vmul.f32 %v2593_v31, %v2593_v31 }
 0x847   : > { %1342 = vadd.xlane.f32.xlu1 %v1339_v34  ;;  %v1338_v35 = vmul.f32 %v2595_v33, %v2595_v33 }
 0x849   : > { %1340 = vadd.xlane.f32.xlu0 %v1338_v35 }
 0x8d0   : > { %v1343_v18 = vpop.xlane.xlu1 %1342 }
 0x8d1   : > { %v1345_v19 = vmul.f32 0.0078125, %v1343_v18 }
 0x8d2   : > { %v1341_v20 = vpop.xlane.xlu0 %1340 }
 0x8d3   : > { %v1347_v21 = vadd.f32 1e-05, %v1345_v19  ;;  %v1344_v0 = vmul.f32 0.0078125, %v1341_v20 }
 0x8d5   : > { %2125 = vrsqrt.f32 %v1347_v21  ;;  %v1346_v63 = vadd.f32 1e-05, %v1344_v0 }
 0x8d7   : > { %2127 = vrsqrt.f32 %v1346_v63 }
 0x8e2   : > { %v2126_v25 = vpop.eup %2125 }
 0x8e3   : > { %v1351_v26 = vmul.f32 %v2126_v25, %v2593_v31  ;;  %v1466_v31 = vld [vmem:[#allocation10 + $0x18] sm:$0xff] }
 0x8e4   : > { %v2128_v27 = vpop.eup %2127  ;;  %1535 = vmatprep.subr.mxu1 %v1466_v31 }
 0x8e5   : > { %v1350_v29 = vmul.f32 %v2128_v27, %v2595_v33  ;;  %v1357_v30 = vmul.f32 %v1355_v24, %v1351_v26  ;;  %1536 = vmatpush1.msra.mxu1 %v1465_v40  ;;  %v1463_v33 = vld [vmem:[#allocation10] sm:$0xff] }
 0x8e6   : > { %1537 = vmatprep.subr.mxu1 %v1464_v57 }
 0x8e7   : > { %v1356_v32 = vmul.f32 %v1355_v24, %v1350_v29  ;;  %v1363_v34 = vadd.f32 %v1361_v28, %v1357_v30  ;;  %1538 = vmatpush1.msra.mxu1 %v1463_v33 }
 0x8e9   : > { %v1362_v35 = vadd.f32 %v1361_v28, %v1356_v32  ;;  %v1365_v37 = vmax.f32 %v1363_v34, 0.0 }
 0x8eb   : > { %v1364_v36 = vmax.f32 %v1362_v35, 0.0 }
 0x8ed   : > { %2034 = vmatprep.mubr.f32.mxu0 %v1364_v36 }
 0x8ee   : > { %2035 = vmatmul.mubr.f32.vlgmr.msra.gmra.mxu0 %v1365_v37 }
 0x9ae   : > { %v2036_v41 = vpop.f32.mrf.mxu0 }
 0x9af   : > { %v1458_v45 = vadd.f32 %v2036_v41, %v1732_v42 }
 0x9b0   : > { %v1452_v43 = vpop.f32.mrf.mxu0 }
 0x9b1   : > { %v1453_v44 = vadd.f32 %v1732_v42, %v1452_v43  ;;  %v1462_v47 = vmax.f32 %v1458_v45, 0.0 }
 0x9b3   : > { %v1461_v46 = vmax.f32 %v1453_v44, 0.0 }
 0x9b5   : > { %1572 = vmatmul.mubr.f32.vlgmr.msra.gmra.mxu1 %v1461_v46 }
 0x9b6   : > { %1577 = vmatprep.mubr.f32.mxu1 %v2321_v53 }
 0x9b9   : > { %1578 = vmatmul.mubr.f32.gmra.mxu1 %v1462_v47 }
 0xa75   : > { %v1573_v51 = vpop.f32.mrf.mxu1 }
 0xa76   : > { %v1574_v52 = vadd.f32 %v1573_v51, %v1500_v49 }
 0xa77   : > { %v1575_v54 = vpop.f32.mrf.mxu1 }
 0xa78   : > { %1584 = vst [vmem:[%s505_s28] sm:$0xff] %v1574_v52  ;;  %v1576_v53 = vadd.f32 %v1575_v54, %v1504_v50 }
 0xa79   : > { %v1579_v58 = vpop.f32.mrf.mxu1 }
 0xa7a   : > { %1585 = vst [vmem:[%s505_s28 + $0x8] sm:$0xff] %v1576_v53  ;;  %v1580_v59 = vadd.f32 %v1579_v58, %v1500_v49 }
 0xa7b   : > { %v1581_v60 = vpop.f32.mrf.mxu1 }
 0xa7c   : > { %1586 = vst [vmem:[%s505_s28 + $0x10] sm:$0xff] %v1580_v59  ;;  %v1582_v61 = vadd.f32 %v1581_v60, %v1504_v50 }
 0xa7e   : > { %1587 = vst [vmem:[%s505_s28 + $0x18] sm:$0xff] %v1582_v61 }
 0xa7f PF: > { %s26_s21 = sadd.s32 1, %s2307_s21  }
 0xa80   : > { %p23_p2 = scmp.ge.s32.totalorder %s26_s21, 4  }
 0xa82   :  { %25 = sbr.rel (!%p23_p2) target bundleno = 4 (0x4), region = 123 }
 0xa87   :  { %1612 = vsyncpa [#allocation3], 1 }
 0xa88   :  { %1614 = vsyncpa [#allocation3 + $0x1], 1 }
 0xa89   :  { %1615 = vsyncpa [#allocation5], 1 }
 0xa8a   :  { %1616 = vsyncpa [#allocation8], 1 }
 0xa8b   :  { %1617 = vsyncpa [#allocation11], 1 }

</bundles_post_ra>
